<compile_context>
chip_gen: v7x
topology: tpu7x:2x2x1
jax: 0.10.0
libtpu: 0.0.40
codegen_flags: <defaults>
</compile_context>

<pallas_src>
import functools
import jax
import jax.numpy as jnp
from jax.experimental import pallas as pl
from jax.experimental.pallas import tpu as pltpu

# ---------------- synthetic BERT config (small) ----------------
VOCAB = 100
HIDDEN = 32
HEADS = 2
HEAD_DIM = HIDDEN // HEADS
INTERMEDIATE = 64
LAYERS = 2
MAX_POS = 64
TYPE_VOCAB = 2
LN_EPS = 1e-12


# ---------------- fused whole-model kernel ----------------
def _fused_bert_kernel(emb_ref, mask_ref, t_ref,
                       eg_ref, ebeta_ref,
                       qkv_w_ref, qkv_b_ref,
                       ao_w_ref, ao_b_ref, ao_g_ref, ao_beta_ref,
                       i_w_ref, i_b_ref,
                       o_w_ref, o_b_ref, o_g_ref, o_beta_ref,
                       out_ref, ctx_ref,
                       *, B, S, heads, head_dim, hidden, layers, eps, scale):
    def layernorm(h, gamma, beta):
        mu = jnp.mean(h, axis=-1, keepdims=True)
        var = jnp.mean((h - mu) * (h - mu), axis=-1, keepdims=True)
        return (h - mu) * jax.lax.rsqrt(var + eps) * gamma + beta

    def gelu(y):
        # tanh-approximate GELU (HF BERT uses erf GELU; ~1e-3-scale difference)
        return 0.5 * y * (1.0 + jnp.tanh(0.7978845608028654 * (y + 0.044715 * y * y * y)))

    # embedding layer-norm (no residual stream -> no zeros tensor needed)
    x = layernorm(emb_ref[...], eg_ref[...], ebeta_ref[...])            # (B*S, H)
    mask = mask_ref[...]                                                # (B, S) additive

    for l in range(layers):                       # unrolled at trace time
        # ---- fused QKV projection: one (B*S, H) @ (H, 3H) matmul ----
        qkv = (jnp.dot(x, qkv_w_ref[l], preferred_element_type=jnp.float32)
               + qkv_b_ref[l])                                          # (B*S, 3H)

        # ---- attention: heads stay packed on lanes; slice per (batch, head) ----
        for b in range(B):
            qkv_rows = qkv[b * S:(b + 1) * S, :]                        # (S, 3H)
            m_b = mask[b:b + 1, :]                                      # (1, S)
            for h in range(heads):
                c0 = h * head_dim
                q = qkv_rows[:, c0:c0 + head_dim]
                k = qkv_rows[:, hidden + c0: hidden + c0 + head_dim]
                v = qkv_rows[:, 2 * hidden + c0: 2 * hidden + c0 + head_dim]
                s = jax.lax.dot_general(q, k, (((1,), (1,)), ((), ())),
                                        preferred_element_type=jnp.float32)
                s = s * scale + m_b
                s = s - jnp.max(s, axis=-1, keepdims=True)
                p = jnp.exp(s)
                p = p / jnp.sum(p, axis=-1, keepdims=True)
                ctx_ref[b * S:(b + 1) * S, c0:c0 + head_dim] = jnp.dot(
                    p, v, preferred_element_type=jnp.float32)

        ctx = ctx_ref[...]                                              # (B*S, H)
        attn_out = (jnp.dot(ctx, ao_w_ref[l], preferred_element_type=jnp.float32)
                    + ao_b_ref[l])
        x = layernorm(attn_out + x, ao_g_ref[l], ao_beta_ref[l])

        # ---- feed-forward ----
        inter = gelu(jnp.dot(x, i_w_ref[l], preferred_element_type=jnp.float32)
                     + i_b_ref[l])
        ffn = jnp.dot(inter, o_w_ref[l], preferred_element_type=jnp.float32) + o_b_ref[l]
        x = layernorm(ffn + x, o_g_ref[l], o_beta_ref[l])

    # ---- BertLatin matmul: out[b] = transforms[b] @ last_hidden_state[b] ----
    # pooler_output is computed by BertModel but unused by BertLatin.forward -> skipped
    for b in range(B):
        out_ref[b] = jnp.dot(t_ref[b], x[b * S:(b + 1) * S, :],
                             preferred_element_type=jnp.float32)


# ---------------- parameters (deterministic synthetic init) ----------------
def init_params(key):
    def nrm(k, shape):
        return jax.random.normal(k, shape, jnp.float32) * 0.02

    keys = jax.random.split(key, 4 + LAYERS)
    params = {
        "word_emb": nrm(keys[0], (VOCAB, HIDDEN)),
        "pos_emb": nrm(keys[1], (MAX_POS, HIDDEN)),
        "type_emb": nrm(keys[2], (TYPE_VOCAB, HIDDEN)),
        "emb_ln_g": jnp.ones((1, HIDDEN), jnp.float32),
        "emb_ln_b": jnp.zeros((1, HIDDEN), jnp.float32),
    }
    qkv_w, ao_w, i_w, o_w = [], [], [], []
    for l in range(LAYERS):
        lk = jax.random.split(keys[4 + l], 6)
        # Q, K, V weights concatenated on the output (lane) axis -> one matmul
        qkv_w.append(jnp.concatenate(
            [nrm(lk[0], (HIDDEN, HIDDEN)),
             nrm(lk[1], (HIDDEN, HIDDEN)),
             nrm(lk[2], (HIDDEN, HIDDEN))], axis=1))
        ao_w.append(nrm(lk[3], (HIDDEN, HIDDEN)))
        i_w.append(nrm(lk[4], (HIDDEN, INTERMEDIATE)))
        o_w.append(nrm(lk[5], (INTERMEDIATE, HIDDEN)))
    params.update({
        "qkv_w": jnp.stack(qkv_w),                                      # (L, H, 3H)
        "qkv_b": jnp.zeros((LAYERS, 1, 3 * HIDDEN), jnp.float32),
        "ao_w": jnp.stack(ao_w),                                        # (L, H, H)
        "ao_b": jnp.zeros((LAYERS, 1, HIDDEN), jnp.float32),
        "ao_ln_g": jnp.ones((LAYERS, 1, HIDDEN), jnp.float32),
        "ao_ln_b": jnp.zeros((LAYERS, 1, HIDDEN), jnp.float32),
        "i_w": jnp.stack(i_w),                                          # (L, H, I)
        "i_b": jnp.zeros((LAYERS, 1, INTERMEDIATE), jnp.float32),
        "o_w": jnp.stack(o_w),                                          # (L, I, H)
        "o_b": jnp.zeros((LAYERS, 1, HIDDEN), jnp.float32),
        "o_ln_g": jnp.ones((LAYERS, 1, HIDDEN), jnp.float32),
        "o_ln_b": jnp.zeros((LAYERS, 1, HIDDEN), jnp.float32),
    })
    return params


# ---------------- forward (BertLatin.forward equivalent) ----------------
@jax.jit
def bert_latin_forward(params, input_ids, attention_mask, transforms):
    B, S = input_ids.shape
    T = transforms.shape[1]
    # embeddings: word + position + token_type (token_type_ids=None -> all zeros)
    # (data-dependent gathers stay in plain JAX)
    emb = (params["word_emb"][input_ids]
           + params["pos_emb"][:S][None, :, :]
           + params["type_emb"][0][None, None, :]).reshape(B * S, HIDDEN)
    # BERT extended attention mask: 0 where attend, -10000 where masked
    ext_mask = (1.0 - attention_mask.astype(jnp.float32)) * -10000.0    # (B, S)

    kernel = functools.partial(
        _fused_bert_kernel, B=B, S=S, heads=HEADS, head_dim=HEAD_DIM,
        hidden=HIDDEN, layers=LAYERS, eps=LN_EPS, scale=1.0 / (HEAD_DIM ** 0.5))

    operands = (emb, ext_mask, transforms.astype(jnp.float32),
                params["emb_ln_g"], params["emb_ln_b"],
                params["qkv_w"], params["qkv_b"],
                params["ao_w"], params["ao_b"], params["ao_ln_g"], params["ao_ln_b"],
                params["i_w"], params["i_b"],
                params["o_w"], params["o_b"], params["o_ln_g"], params["o_ln_b"])

    def full_spec(shape):
        ndim = len(shape)
        return pl.BlockSpec(shape, lambda i, _n=ndim: (0,) * _n)

    out = pl.pallas_call(
        kernel,
        out_shape=jax.ShapeDtypeStruct((B, T, HIDDEN), jnp.float32),
        grid=(1,),
        in_specs=[full_spec(op.shape) for op in operands],
        out_specs=full_spec((B, T, HIDDEN)),
        scratch_shapes=[pltpu.VMEM((B * S, HIDDEN), jnp.float32)],
        compiler_params=pltpu.CompilerParams(dimension_semantics=("arbitrary",)),
    )(*operands)
    return out


if __name__ == "__main__":
    key = jax.random.PRNGKey(0)
    kp, kid, kt = jax.random.split(key, 3)
    params = init_params(kp)

    B, S, T = 2, 8, 8
    input_ids = jax.random.randint(kid, (B, S), 0, VOCAB, dtype=jnp.int32)
    attention_mask = jnp.ones((B, S), jnp.int32).at[1, 6:].set(0)   # pad last 2 tokens of batch 1
    transforms = jax.random.normal(kt, (B, T, S), jnp.float32)

    out = bert_latin_forward(params, input_ids, attention_mask, transforms)
    out = jax.block_until_ready(out)
    assert out.shape == (B, T, HIDDEN) and out.dtype == jnp.float32
    print("KERNEL_OK")
</pallas_src>

<mosaic_0001>
module attributes {stable_mosaic.version = 11 : i64} {
  func.func @_fused_bert_kernel(%arg0: i32, %arg1: memref<16x32xf32, #tpu.memory_space<vmem>>, %arg2: memref<2x8xf32, #tpu.memory_space<vmem>>, %arg3: memref<2x8x8xf32, #tpu.memory_space<vmem>>, %arg4: memref<1x32xf32, #tpu.memory_space<vmem>>, %arg5: memref<1x32xf32, #tpu.memory_space<vmem>>, %arg6: memref<2x32x96xf32, #tpu.memory_space<vmem>>, %arg7: memref<2x1x96xf32, #tpu.memory_space<vmem>>, %arg8: memref<2x32x32xf32, #tpu.memory_space<vmem>>, %arg9: memref<2x1x32xf32, #tpu.memory_space<vmem>>, %arg10: memref<2x1x32xf32, #tpu.memory_space<vmem>>, %arg11: memref<2x1x32xf32, #tpu.memory_space<vmem>>, %arg12: memref<2x32x64xf32, #tpu.memory_space<vmem>>, %arg13: memref<2x1x64xf32, #tpu.memory_space<vmem>>, %arg14: memref<2x64x32xf32, #tpu.memory_space<vmem>>, %arg15: memref<2x1x32xf32, #tpu.memory_space<vmem>>, %arg16: memref<2x1x32xf32, #tpu.memory_space<vmem>>, %arg17: memref<2x1x32xf32, #tpu.memory_space<vmem>>, %arg18: memref<2x8x32xf32, #tpu.memory_space<vmem>>, %arg19: memref<16x32xf32, #tpu.memory_space<vmem>>) attributes {dimension_semantics = [#tpu.dimension_semantics<arbitrary>], iteration_bounds = array<i64: 1>, scalar_prefetch = 0 : i64, scratch_operands = 1 : i64, tpu.core_type = #tpu.core_type<tc>, window_params = [{pipeline_mode = #tpu.pipeline_mode<synchronous>, transform_indices = @transform_0, window_bounds = array<i64: 16, 32>}, {pipeline_mode = #tpu.pipeline_mode<synchronous>, transform_indices = @transform_1, window_bounds = array<i64: 2, 8>}, {pipeline_mode = #tpu.pipeline_mode<synchronous>, transform_indices = @transform_2, window_bounds = array<i64: 2, 8, 8>}, {pipeline_mode = #tpu.pipeline_mode<synchronous>, transform_indices = @transform_3, window_bounds = array<i64: 1, 32>}, {pipeline_mode = #tpu.pipeline_mode<synchronous>, transform_indices = @transform_4, window_bounds = array<i64: 1, 32>}, {pipeline_mode = #tpu.pipeline_mode<synchronous>, transform_indices = @transform_5, window_bounds = array<i64: 2, 32, 96>}, {pipeline_mode = #tpu.pipeline_mode<synchronous>, transform_indices = @transform_6, window_bounds = array<i64: 2, 1, 96>}, {pipeline_mode = #tpu.pipeline_mode<synchronous>, transform_indices = @transform_7, window_bounds = array<i64: 2, 32, 32>}, {pipeline_mode = #tpu.pipeline_mode<synchronous>, transform_indices = @transform_8, window_bounds = array<i64: 2, 1, 32>}, {pipeline_mode = #tpu.pipeline_mode<synchronous>, transform_indices = @transform_9, window_bounds = array<i64: 2, 1, 32>}, {pipeline_mode = #tpu.pipeline_mode<synchronous>, transform_indices = @transform_10, window_bounds = array<i64: 2, 1, 32>}, {pipeline_mode = #tpu.pipeline_mode<synchronous>, transform_indices = @transform_11, window_bounds = array<i64: 2, 32, 64>}, {pipeline_mode = #tpu.pipeline_mode<synchronous>, transform_indices = @transform_12, window_bounds = array<i64: 2, 1, 64>}, {pipeline_mode = #tpu.pipeline_mode<synchronous>, transform_indices = @transform_13, window_bounds = array<i64: 2, 64, 32>}, {pipeline_mode = #tpu.pipeline_mode<synchronous>, transform_indices = @transform_14, window_bounds = array<i64: 2, 1, 32>}, {pipeline_mode = #tpu.pipeline_mode<synchronous>, transform_indices = @transform_15, window_bounds = array<i64: 2, 1, 32>}, {pipeline_mode = #tpu.pipeline_mode<synchronous>, transform_indices = @transform_16, window_bounds = array<i64: 2, 1, 32>}, {pipeline_mode = #tpu.pipeline_mode<synchronous>, transform_indices = @transform_17, window_bounds = array<i64: 2, 8, 32>}]} {
    %c0 = arith.constant 0 : index
    %c0_0 = arith.constant 0 : index
    %0 = vector.load %arg1[%c0, %c0_0] : memref<16x32xf32, #tpu.memory_space<vmem>>, vector<16x32xf32>
    %c0_1 = arith.constant 0 : index
    %c0_2 = arith.constant 0 : index
    %1 = vector.load %arg4[%c0_1, %c0_2] : memref<1x32xf32, #tpu.memory_space<vmem>>, vector<1x32xf32>
    %c0_3 = arith.constant 0 : index
    %c0_4 = arith.constant 0 : index
    %2 = vector.load %arg5[%c0_3, %c0_4] : memref<1x32xf32, #tpu.memory_space<vmem>>, vector<1x32xf32>
    %cst = arith.constant dense<0.000000e+00> : vector<16xf32>
    %3 = vector.multi_reduction <add>, %0, %cst [1] : vector<16x32xf32> to vector<16xf32>
    %4 = vector.shape_cast %3 : vector<16xf32> to vector<16x1xf32>
    %cst_5 = arith.constant 3.200000e+01 : f32
    %5 = vector.broadcast %cst_5 : f32 to vector<16x1xf32>
    %6 = arith.divf %4, %5 : vector<16x1xf32>
    %7 = vector.broadcast %6 : vector<16x1xf32> to vector<16x32xf32>
    %8 = arith.subf %0, %7 : vector<16x32xf32>
    %9 = vector.broadcast %6 : vector<16x1xf32> to vector<16x32xf32>
    %10 = arith.subf %0, %9 : vector<16x32xf32>
    %11 = arith.mulf %8, %10 : vector<16x32xf32>
    %cst_6 = arith.constant dense<0.000000e+00> : vector<16xf32>
    %12 = vector.multi_reduction <add>, %11, %cst_6 [1] : vector<16x32xf32> to vector<16xf32>
    %13 = vector.shape_cast %12 : vector<16xf32> to vector<16x1xf32>
    %cst_7 = arith.constant 3.200000e+01 : f32
    %14 = vector.broadcast %cst_7 : f32 to vector<16x1xf32>
    %15 = arith.divf %13, %14 : vector<16x1xf32>
    %16 = vector.broadcast %6 : vector<16x1xf32> to vector<16x32xf32>
    %17 = arith.subf %0, %16 : vector<16x32xf32>
    %cst_8 = arith.constant 9.99999996E-13 : f32
    %18 = vector.broadcast %cst_8 : f32 to vector<16x1xf32>
    %19 = arith.addf %15, %18 : vector<16x1xf32>
    %20 = math.rsqrt %19 : vector<16x1xf32>
    %21 = vector.broadcast %20 : vector<16x1xf32> to vector<16x32xf32>
    %22 = arith.mulf %17, %21 : vector<16x32xf32>
    %23 = vector.broadcast %1 : vector<1x32xf32> to vector<16x32xf32>
    %24 = arith.mulf %22, %23 : vector<16x32xf32>
    %25 = vector.broadcast %2 : vector<1x32xf32> to vector<16x32xf32>
    %26 = arith.addf %24, %25 : vector<16x32xf32>
    %c0_9 = arith.constant 0 : index
    %c0_10 = arith.constant 0 : index
    %27 = vector.load %arg2[%c0_9, %c0_10] : memref<2x8xf32, #tpu.memory_space<vmem>>, vector<2x8xf32>
    %c0_11 = arith.constant 0 : index
    %c0_12 = arith.constant 0 : index
    %c0_13 = arith.constant 0 : index
    %28 = vector.load %arg6[%c0_11, %c0_12, %c0_13] : memref<2x32x96xf32, #tpu.memory_space<vmem>>, vector<1x32x96xf32>
    %29 = vector.shape_cast %28 : vector<1x32x96xf32> to vector<32x96xf32>
    %cst_14 = arith.constant dense<0.000000e+00> : vector<16x96xf32>
    %30 = tpu.matmul %26, %29, %cst_14 {dimension_numbers = #tpu.dot_dimension_numbers<[1], [0], [0], [1], [0, 0, 1, 1], [], []>} : vector<16x32xf32>, vector<32x96xf32>, vector<16x96xf32> -> vector<16x96xf32>
    %c0_15 = arith.constant 0 : index
    %c0_16 = arith.constant 0 : index
    %c0_17 = arith.constant 0 : index
    %31 = vector.load %arg7[%c0_15, %c0_16, %c0_17] : memref<2x1x96xf32, #tpu.memory_space<vmem>>, vector<1x1x96xf32>
    %32 = vector.shape_cast %31 : vector<1x1x96xf32> to vector<1x96xf32>
    %33 = vector.broadcast %32 : vector<1x96xf32> to vector<16x96xf32>
    %34 = arith.addf %30, %33 : vector<16x96xf32>
    %35 = vector.extract_strided_slice %34 {offsets = [0, 0], sizes = [8, 96], strides = [1, 1]} : vector<16x96xf32> to vector<8x96xf32>
    %36 = vector.extract_strided_slice %27 {offsets = [0, 0], sizes = [1, 8], strides = [1, 1]} : vector<2x8xf32> to vector<1x8xf32>
    %37 = vector.extract_strided_slice %35 {offsets = [0, 0], sizes = [8, 16], strides = [1, 1]} : vector<8x96xf32> to vector<8x16xf32>
    %38 = vector.extract_strided_slice %35 {offsets = [0, 32], sizes = [8, 16], strides = [1, 1]} : vector<8x96xf32> to vector<8x16xf32>
    %39 = vector.extract_strided_slice %35 {offsets = [0, 64], sizes = [8, 16], strides = [1, 1]} : vector<8x96xf32> to vector<8x16xf32>
    %cst_18 = arith.constant dense<0.000000e+00> : vector<8x8xf32>
    %40 = tpu.matmul %37, %38, %cst_18 {dimension_numbers = #tpu.dot_dimension_numbers<[1], [1], [0], [0], [0, 0, 1, 0], [], []>} : vector<8x16xf32>, vector<8x16xf32>, vector<8x8xf32> -> vector<8x8xf32>
    %cst_19 = arith.constant 2.500000e-01 : f32
    %41 = vector.broadcast %cst_19 : f32 to vector<8x8xf32>
    %42 = arith.mulf %40, %41 : vector<8x8xf32>
    %43 = vector.broadcast %36 : vector<1x8xf32> to vector<8x8xf32>
    %44 = arith.addf %42, %43 : vector<8x8xf32>
    %cst_20 = arith.constant dense<0xFF800000> : vector<8xf32>
    %45 = vector.multi_reduction <maximumf>, %44, %cst_20 [1] : vector<8x8xf32> to vector<8xf32>
    %46 = vector.shape_cast %45 : vector<8xf32> to vector<8x1xf32>
    %47 = vector.broadcast %46 : vector<8x1xf32> to vector<8x8xf32>
    %48 = arith.subf %44, %47 : vector<8x8xf32>
    %49 = math.exp %48 : vector<8x8xf32>
    %cst_21 = arith.constant dense<0.000000e+00> : vector<8xf32>
    %50 = vector.multi_reduction <add>, %49, %cst_21 [1] : vector<8x8xf32> to vector<8xf32>
    %51 = vector.shape_cast %50 : vector<8xf32> to vector<8x1xf32>
    %52 = vector.broadcast %51 : vector<8x1xf32> to vector<8x8xf32>
    %53 = arith.divf %49, %52 : vector<8x8xf32>
    %cst_22 = arith.constant dense<0.000000e+00> : vector<8x16xf32>
    %54 = tpu.matmul %53, %39, %cst_22 {dimension_numbers = #tpu.dot_dimension_numbers<[1], [0], [0], [1], [0, 0, 1, 1], [], []>} : vector<8x8xf32>, vector<8x16xf32>, vector<8x16xf32> -> vector<8x16xf32>
    %c0_23 = arith.constant 0 : index
    %c0_24 = arith.constant 0 : index
    %55 = vector.load %arg19[%c0_23, %c0_24] : memref<16x32xf32, #tpu.memory_space<vmem>>, vector<8x16xf32>
    tpu.vector_store %arg19[%c0_23, %c0_24], %54 {strides = array<i32>} : memref<16x32xf32, #tpu.memory_space<vmem>>, vector<8x16xf32>,
    %56 = vector.extract_strided_slice %35 {offsets = [0, 16], sizes = [8, 16], strides = [1, 1]} : vector<8x96xf32> to vector<8x16xf32>
    %57 = vector.extract_strided_slice %35 {offsets = [0, 48], sizes = [8, 16], strides = [1, 1]} : vector<8x96xf32> to vector<8x16xf32>
    %58 = vector.extract_strided_slice %35 {offsets = [0, 80], sizes = [8, 16], strides = [1, 1]} : vector<8x96xf32> to vector<8x16xf32>
    %cst_25 = arith.constant dense<0.000000e+00> : vector<8x8xf32>
    %59 = tpu.matmul %56, %57, %cst_25 {dimension_numbers = #tpu.dot_dimension_numbers<[1], [1], [0], [0], [0, 0, 1, 0], [], []>} : vector<8x16xf32>, vector<8x16xf32>, vector<8x8xf32> -> vector<8x8xf32>
    %cst_26 = arith.constant 2.500000e-01 : f32
    %60 = vector.broadcast %cst_26 : f32 to vector<8x8xf32>
    %61 = arith.mulf %59, %60 : vector<8x8xf32>
    %62 = vector.broadcast %36 : vector<1x8xf32> to vector<8x8xf32>
    %63 = arith.addf %61, %62 : vector<8x8xf32>
    %cst_27 = arith.constant dense<0xFF800000> : vector<8xf32>
    %64 = vector.multi_reduction <maximumf>, %63, %cst_27 [1] : vector<8x8xf32> to vector<8xf32>
    %65 = vector.shape_cast %64 : vector<8xf32> to vector<8x1xf32>
    %66 = vector.broadcast %65 : vector<8x1xf32> to vector<8x8xf32>
    %67 = arith.subf %63, %66 : vector<8x8xf32>
    %68 = math.exp %67 : vector<8x8xf32>
    %cst_28 = arith.constant dense<0.000000e+00> : vector<8xf32>
    %69 = vector.multi_reduction <add>, %68, %cst_28 [1] : vector<8x8xf32> to vector<8xf32>
    %70 = vector.shape_cast %69 : vector<8xf32> to vector<8x1xf32>
    %71 = vector.broadcast %70 : vector<8x1xf32> to vector<8x8xf32>
    %72 = arith.divf %68, %71 : vector<8x8xf32>
    %cst_29 = arith.constant dense<0.000000e+00> : vector<8x16xf32>
    %73 = tpu.matmul %72, %58, %cst_29 {dimension_numbers = #tpu.dot_dimension_numbers<[1], [0], [0], [1], [0, 0, 1, 1], [], []>} : vector<8x8xf32>, vector<8x16xf32>, vector<8x16xf32> -> vector<8x16xf32>
    %c0_30 = arith.constant 0 : index
    %c16 = arith.constant 16 : index
    %74 = vector.load %arg19[%c0_30, %c16] : memref<16x32xf32, #tpu.memory_space<vmem>>, vector<8x16xf32>
    tpu.vector_store %arg19[%c0_30, %c16], %73 {strides = array<i32>} : memref<16x32xf32, #tpu.memory_space<vmem>>, vector<8x16xf32>,
    %75 = vector.extract_strided_slice %34 {offsets = [8, 0], sizes = [8, 96], strides = [1, 1]} : vector<16x96xf32> to vector<8x96xf32>
    %76 = vector.extract_strided_slice %27 {offsets = [1, 0], sizes = [1, 8], strides = [1, 1]} : vector<2x8xf32> to vector<1x8xf32>
    %77 = vector.extract_strided_slice %75 {offsets = [0, 0], sizes = [8, 16], strides = [1, 1]} : vector<8x96xf32> to vector<8x16xf32>
    %78 = vector.extract_strided_slice %75 {offsets = [0, 32], sizes = [8, 16], strides = [1, 1]} : vector<8x96xf32> to vector<8x16xf32>
    %79 = vector.extract_strided_slice %75 {offsets = [0, 64], sizes = [8, 16], strides = [1, 1]} : vector<8x96xf32> to vector<8x16xf32>
    %cst_31 = arith.constant dense<0.000000e+00> : vector<8x8xf32>
    %80 = tpu.matmul %77, %78, %cst_31 {dimension_numbers = #tpu.dot_dimension_numbers<[1], [1], [0], [0], [0, 0, 1, 0], [], []>} : vector<8x16xf32>, vector<8x16xf32>, vector<8x8xf32> -> vector<8x8xf32>
    %cst_32 = arith.constant 2.500000e-01 : f32
    %81 = vector.broadcast %cst_32 : f32 to vector<8x8xf32>
    %82 = arith.mulf %80, %81 : vector<8x8xf32>
    %83 = vector.broadcast %76 : vector<1x8xf32> to vector<8x8xf32>
    %84 = arith.addf %82, %83 : vector<8x8xf32>
    %cst_33 = arith.constant dense<0xFF800000> : vector<8xf32>
    %85 = vector.multi_reduction <maximumf>, %84, %cst_33 [1] : vector<8x8xf32> to vector<8xf32>
    %86 = vector.shape_cast %85 : vector<8xf32> to vector<8x1xf32>
    %87 = vector.broadcast %86 : vector<8x1xf32> to vector<8x8xf32>
    %88 = arith.subf %84, %87 : vector<8x8xf32>
    %89 = math.exp %88 : vector<8x8xf32>
    %cst_34 = arith.constant dense<0.000000e+00> : vector<8xf32>
    %90 = vector.multi_reduction <add>, %89, %cst_34 [1] : vector<8x8xf32> to vector<8xf32>
    %91 = vector.shape_cast %90 : vector<8xf32> to vector<8x1xf32>
    %92 = vector.broadcast %91 : vector<8x1xf32> to vector<8x8xf32>
    %93 = arith.divf %89, %92 : vector<8x8xf32>
    %cst_35 = arith.constant dense<0.000000e+00> : vector<8x16xf32>
    %94 = tpu.matmul %93, %79, %cst_35 {dimension_numbers = #tpu.dot_dimension_numbers<[1], [0], [0], [1], [0, 0, 1, 1], [], []>} : vector<8x8xf32>, vector<8x16xf32>, vector<8x16xf32> -> vector<8x16xf32>
    %c8 = arith.constant 8 : index
    %c0_36 = arith.constant 0 : index
    %95 = vector.load %arg19[%c8, %c0_36] : memref<16x32xf32, #tpu.memory_space<vmem>>, vector<8x16xf32>
    tpu.vector_store %arg19[%c8, %c0_36], %94 {strides = array<i32>} : memref<16x32xf32, #tpu.memory_space<vmem>>, vector<8x16xf32>,
    %96 = vector.extract_strided_slice %75 {offsets = [0, 16], sizes = [8, 16], strides = [1, 1]} : vector<8x96xf32> to vector<8x16xf32>
    %97 = vector.extract_strided_slice %75 {offsets = [0, 48], sizes = [8, 16], strides = [1, 1]} : vector<8x96xf32> to vector<8x16xf32>
    %98 = vector.extract_strided_slice %75 {offsets = [0, 80], sizes = [8, 16], strides = [1, 1]} : vector<8x96xf32> to vector<8x16xf32>
    %cst_37 = arith.constant dense<0.000000e+00> : vector<8x8xf32>
    %99 = tpu.matmul %96, %97, %cst_37 {dimension_numbers = #tpu.dot_dimension_numbers<[1], [1], [0], [0], [0, 0, 1, 0], [], []>} : vector<8x16xf32>, vector<8x16xf32>, vector<8x8xf32> -> vector<8x8xf32>
    %cst_38 = arith.constant 2.500000e-01 : f32
    %100 = vector.broadcast %cst_38 : f32 to vector<8x8xf32>
    %101 = arith.mulf %99, %100 : vector<8x8xf32>
    %102 = vector.broadcast %76 : vector<1x8xf32> to vector<8x8xf32>
    %103 = arith.addf %101, %102 : vector<8x8xf32>
    %cst_39 = arith.constant dense<0xFF800000> : vector<8xf32>
    %104 = vector.multi_reduction <maximumf>, %103, %cst_39 [1] : vector<8x8xf32> to vector<8xf32>
    %105 = vector.shape_cast %104 : vector<8xf32> to vector<8x1xf32>
    %106 = vector.broadcast %105 : vector<8x1xf32> to vector<8x8xf32>
    %107 = arith.subf %103, %106 : vector<8x8xf32>
    %108 = math.exp %107 : vector<8x8xf32>
    %cst_40 = arith.constant dense<0.000000e+00> : vector<8xf32>
    %109 = vector.multi_reduction <add>, %108, %cst_40 [1] : vector<8x8xf32> to vector<8xf32>
    %110 = vector.shape_cast %109 : vector<8xf32> to vector<8x1xf32>
    %111 = vector.broadcast %110 : vector<8x1xf32> to vector<8x8xf32>
    %112 = arith.divf %108, %111 : vector<8x8xf32>
    %cst_41 = arith.constant dense<0.000000e+00> : vector<8x16xf32>
    %113 = tpu.matmul %112, %98, %cst_41 {dimension_numbers = #tpu.dot_dimension_numbers<[1], [0], [0], [1], [0, 0, 1, 1], [], []>} : vector<8x8xf32>, vector<8x16xf32>, vector<8x16xf32> -> vector<8x16xf32>
    %c8_42 = arith.constant 8 : index
    %c16_43 = arith.constant 16 : index
    %114 = vector.load %arg19[%c8_42, %c16_43] : memref<16x32xf32, #tpu.memory_space<vmem>>, vector<8x16xf32>
    tpu.vector_store %arg19[%c8_42, %c16_43], %113 {strides = array<i32>} : memref<16x32xf32, #tpu.memory_space<vmem>>, vector<8x16xf32>,
    %c0_44 = arith.constant 0 : index
    %c0_45 = arith.constant 0 : index
    %115 = vector.load %arg19[%c0_44, %c0_45] : memref<16x32xf32, #tpu.memory_space<vmem>>, vector<16x32xf32>
    %c0_46 = arith.constant 0 : index
    %c0_47 = arith.constant 0 : index
    %c0_48 = arith.constant 0 : index
    %116 = vector.load %arg8[%c0_46, %c0_47, %c0_48] : memref<2x32x32xf32, #tpu.memory_space<vmem>>, vector<1x32x32xf32>
    %117 = vector.shape_cast %116 : vector<1x32x32xf32> to vector<32x32xf32>
    %cst_49 = arith.constant dense<0.000000e+00> : vector<16x32xf32>
    %118 = tpu.matmul %115, %117, %cst_49 {dimension_numbers = #tpu.dot_dimension_numbers<[1], [0], [0], [1], [0, 0, 1, 1], [], []>} : vector<16x32xf32>, vector<32x32xf32>, vector<16x32xf32> -> vector<16x32xf32>
    %c0_50 = arith.constant 0 : index
    %c0_51 = arith.constant 0 : index
    %c0_52 = arith.constant 0 : index
    %119 = vector.load %arg9[%c0_50, %c0_51, %c0_52] : memref<2x1x32xf32, #tpu.memory_space<vmem>>, vector<1x1x32xf32>
    %120 = vector.shape_cast %119 : vector<1x1x32xf32> to vector<1x32xf32>
    %121 = vector.broadcast %120 : vector<1x32xf32> to vector<16x32xf32>
    %122 = arith.addf %118, %121 : vector<16x32xf32>
    %123 = arith.addf %122, %26 : vector<16x32xf32>
    %c0_53 = arith.constant 0 : index
    %c0_54 = arith.constant 0 : index
    %c0_55 = arith.constant 0 : index
    %124 = vector.load %arg10[%c0_53, %c0_54, %c0_55] : memref<2x1x32xf32, #tpu.memory_space<vmem>>, vector<1x1x32xf32>
    %125 = vector.shape_cast %124 : vector<1x1x32xf32> to vector<1x32xf32>
    %c0_56 = arith.constant 0 : index
    %c0_57 = arith.constant 0 : index
    %c0_58 = arith.constant 0 : index
    %126 = vector.load %arg11[%c0_56, %c0_57, %c0_58] : memref<2x1x32xf32, #tpu.memory_space<vmem>>, vector<1x1x32xf32>
    %127 = vector.shape_cast %126 : vector<1x1x32xf32> to vector<1x32xf32>
    %cst_59 = arith.constant dense<0.000000e+00> : vector<16xf32>
    %128 = vector.multi_reduction <add>, %123, %cst_59 [1] : vector<16x32xf32> to vector<16xf32>
    %129 = vector.shape_cast %128 : vector<16xf32> to vector<16x1xf32>
    %cst_60 = arith.constant 3.200000e+01 : f32
    %130 = vector.broadcast %cst_60 : f32 to vector<16x1xf32>
    %131 = arith.divf %129, %130 : vector<16x1xf32>
    %132 = vector.broadcast %131 : vector<16x1xf32> to vector<16x32xf32>
    %133 = arith.subf %123, %132 : vector<16x32xf32>
    %134 = vector.broadcast %131 : vector<16x1xf32> to vector<16x32xf32>
    %135 = arith.subf %123, %134 : vector<16x32xf32>
    %136 = arith.mulf %133, %135 : vector<16x32xf32>
    %cst_61 = arith.constant dense<0.000000e+00> : vector<16xf32>
    %137 = vector.multi_reduction <add>, %136, %cst_61 [1] : vector<16x32xf32> to vector<16xf32>
    %138 = vector.shape_cast %137 : vector<16xf32> to vector<16x1xf32>
    %cst_62 = arith.constant 3.200000e+01 : f32
    %139 = vector.broadcast %cst_62 : f32 to vector<16x1xf32>
    %140 = arith.divf %138, %139 : vector<16x1xf32>
    %141 = vector.broadcast %131 : vector<16x1xf32> to vector<16x32xf32>
    %142 = arith.subf %123, %141 : vector<16x32xf32>
    %cst_63 = arith.constant 9.99999996E-13 : f32
    %143 = vector.broadcast %cst_63 : f32 to vector<16x1xf32>
    %144 = arith.addf %140, %143 : vector<16x1xf32>
    %145 = math.rsqrt %144 : vector<16x1xf32>
    %146 = vector.broadcast %145 : vector<16x1xf32> to vector<16x32xf32>
    %147 = arith.mulf %142, %146 : vector<16x32xf32>
    %148 = vector.broadcast %125 : vector<1x32xf32> to vector<16x32xf32>
    %149 = arith.mulf %147, %148 : vector<16x32xf32>
    %150 = vector.broadcast %127 : vector<1x32xf32> to vector<16x32xf32>
    %151 = arith.addf %149, %150 : vector<16x32xf32>
    %c0_64 = arith.constant 0 : index
    %c0_65 = arith.constant 0 : index
    %c0_66 = arith.constant 0 : index
    %152 = vector.load %arg12[%c0_64, %c0_65, %c0_66] : memref<2x32x64xf32, #tpu.memory_space<vmem>>, vector<1x32x64xf32>
    %153 = vector.shape_cast %152 : vector<1x32x64xf32> to vector<32x64xf32>
    %cst_67 = arith.constant dense<0.000000e+00> : vector<16x64xf32>
    %154 = tpu.matmul %151, %153, %cst_67 {dimension_numbers = #tpu.dot_dimension_numbers<[1], [0], [0], [1], [0, 0, 1, 1], [], []>} : vector<16x32xf32>, vector<32x64xf32>, vector<16x64xf32> -> vector<16x64xf32>
    %c0_68 = arith.constant 0 : index
    %c0_69 = arith.constant 0 : index
    %c0_70 = arith.constant 0 : index
    %155 = vector.load %arg13[%c0_68, %c0_69, %c0_70] : memref<2x1x64xf32, #tpu.memory_space<vmem>>, vector<1x1x64xf32>
    %156 = vector.shape_cast %155 : vector<1x1x64xf32> to vector<1x64xf32>
    %157 = vector.broadcast %156 : vector<1x64xf32> to vector<16x64xf32>
    %158 = arith.addf %154, %157 : vector<16x64xf32>
    %cst_71 = arith.constant 5.000000e-01 : f32
    %159 = vector.broadcast %cst_71 : f32 to vector<16x64xf32>
    %160 = arith.mulf %159, %158 : vector<16x64xf32>
    %cst_72 = arith.constant 4.471500e-02 : f32
    %161 = vector.broadcast %cst_72 : f32 to vector<16x64xf32>
    %162 = arith.mulf %161, %158 : vector<16x64xf32>
    %163 = arith.mulf %162, %158 : vector<16x64xf32>
    %164 = arith.mulf %163, %158 : vector<16x64xf32>
    %165 = arith.addf %158, %164 : vector<16x64xf32>
    %cst_73 = arith.constant 0.797884583 : f32
    %166 = vector.broadcast %cst_73 : f32 to vector<16x64xf32>
    %167 = arith.mulf %166, %165 : vector<16x64xf32>
    %168 = math.tanh %167 : vector<16x64xf32>
    %cst_74 = arith.constant 1.000000e+00 : f32
    %169 = vector.broadcast %cst_74 : f32 to vector<16x64xf32>
    %170 = arith.addf %169, %168 : vector<16x64xf32>
    %171 = arith.mulf %160, %170 : vector<16x64xf32>
    %c0_75 = arith.constant 0 : index
    %c0_76 = arith.constant 0 : index
    %c0_77 = arith.constant 0 : index
    %172 = vector.load %arg14[%c0_75, %c0_76, %c0_77] : memref<2x64x32xf32, #tpu.memory_space<vmem>>, vector<1x64x32xf32>
    %173 = vector.shape_cast %172 : vector<1x64x32xf32> to vector<64x32xf32>
    %cst_78 = arith.constant dense<0.000000e+00> : vector<16x32xf32>
    %174 = tpu.matmul %171, %173, %cst_78 {dimension_numbers = #tpu.dot_dimension_numbers<[1], [0], [0], [1], [0, 0, 1, 1], [], []>} : vector<16x64xf32>, vector<64x32xf32>, vector<16x32xf32> -> vector<16x32xf32>
    %c0_79 = arith.constant 0 : index
    %c0_80 = arith.constant 0 : index
    %c0_81 = arith.constant 0 : index
    %175 = vector.load %arg15[%c0_79, %c0_80, %c0_81] : memref<2x1x32xf32, #tpu.memory_space<vmem>>, vector<1x1x32xf32>
    %176 = vector.shape_cast %175 : vector<1x1x32xf32> to vector<1x32xf32>
    %177 = vector.broadcast %176 : vector<1x32xf32> to vector<16x32xf32>
    %178 = arith.addf %174, %177 : vector<16x32xf32>
    %179 = arith.addf %178, %151 : vector<16x32xf32>
    %c0_82 = arith.constant 0 : index
    %c0_83 = arith.constant 0 : index
    %c0_84 = arith.constant 0 : index
    %180 = vector.load %arg16[%c0_82, %c0_83, %c0_84] : memref<2x1x32xf32, #tpu.memory_space<vmem>>, vector<1x1x32xf32>
    %181 = vector.shape_cast %180 : vector<1x1x32xf32> to vector<1x32xf32>
    %c0_85 = arith.constant 0 : index
    %c0_86 = arith.constant 0 : index
    %c0_87 = arith.constant 0 : index
    %182 = vector.load %arg17[%c0_85, %c0_86, %c0_87] : memref<2x1x32xf32, #tpu.memory_space<vmem>>, vector<1x1x32xf32>
    %183 = vector.shape_cast %182 : vector<1x1x32xf32> to vector<1x32xf32>
    %cst_88 = arith.constant dense<0.000000e+00> : vector<16xf32>
    %184 = vector.multi_reduction <add>, %179, %cst_88 [1] : vector<16x32xf32> to vector<16xf32>
    %185 = vector.shape_cast %184 : vector<16xf32> to vector<16x1xf32>
    %cst_89 = arith.constant 3.200000e+01 : f32
    %186 = vector.broadcast %cst_89 : f32 to vector<16x1xf32>
    %187 = arith.divf %185, %186 : vector<16x1xf32>
    %188 = vector.broadcast %187 : vector<16x1xf32> to vector<16x32xf32>
    %189 = arith.subf %179, %188 : vector<16x32xf32>
    %190 = vector.broadcast %187 : vector<16x1xf32> to vector<16x32xf32>
    %191 = arith.subf %179, %190 : vector<16x32xf32>
    %192 = arith.mulf %189, %191 : vector<16x32xf32>
    %cst_90 = arith.constant dense<0.000000e+00> : vector<16xf32>
    %193 = vector.multi_reduction <add>, %192, %cst_90 [1] : vector<16x32xf32> to vector<16xf32>
    %194 = vector.shape_cast %193 : vector<16xf32> to vector<16x1xf32>
    %cst_91 = arith.constant 3.200000e+01 : f32
    %195 = vector.broadcast %cst_91 : f32 to vector<16x1xf32>
    %196 = arith.divf %194, %195 : vector<16x1xf32>
    %197 = vector.broadcast %187 : vector<16x1xf32> to vector<16x32xf32>
    %198 = arith.subf %179, %197 : vector<16x32xf32>
    %cst_92 = arith.constant 9.99999996E-13 : f32
    %199 = vector.broadcast %cst_92 : f32 to vector<16x1xf32>
    %200 = arith.addf %196, %199 : vector<16x1xf32>
    %201 = math.rsqrt %200 : vector<16x1xf32>
    %202 = vector.broadcast %201 : vector<16x1xf32> to vector<16x32xf32>
    %203 = arith.mulf %198, %202 : vector<16x32xf32>
    %204 = vector.broadcast %181 : vector<1x32xf32> to vector<16x32xf32>
    %205 = arith.mulf %203, %204 : vector<16x32xf32>
    %206 = vector.broadcast %183 : vector<1x32xf32> to vector<16x32xf32>
    %207 = arith.addf %205, %206 : vector<16x32xf32>
    %c1 = arith.constant 1 : index
    %c0_93 = arith.constant 0 : index
    %c0_94 = arith.constant 0 : index
    %208 = vector.load %arg6[%c1, %c0_93, %c0_94] : memref<2x32x96xf32, #tpu.memory_space<vmem>>, vector<1x32x96xf32>
    %209 = vector.shape_cast %208 : vector<1x32x96xf32> to vector<32x96xf32>
    %cst_95 = arith.constant dense<0.000000e+00> : vector<16x96xf32>
    %210 = tpu.matmul %207, %209, %cst_95 {dimension_numbers = #tpu.dot_dimension_numbers<[1], [0], [0], [1], [0, 0, 1, 1], [], []>} : vector<16x32xf32>, vector<32x96xf32>, vector<16x96xf32> -> vector<16x96xf32>
    %c1_96 = arith.constant 1 : index
    %c0_97 = arith.constant 0 : index
    %c0_98 = arith.constant 0 : index
    %211 = vector.load %arg7[%c1_96, %c0_97, %c0_98] : memref<2x1x96xf32, #tpu.memory_space<vmem>>, vector<1x1x96xf32>
    %212 = vector.shape_cast %211 : vector<1x1x96xf32> to vector<1x96xf32>
    %213 = vector.broadcast %212 : vector<1x96xf32> to vector<16x96xf32>
    %214 = arith.addf %210, %213 : vector<16x96xf32>
    %215 = vector.extract_strided_slice %214 {offsets = [0, 0], sizes = [8, 96], strides = [1, 1]} : vector<16x96xf32> to vector<8x96xf32>
    %216 = vector.extract_strided_slice %27 {offsets = [0, 0], sizes = [1, 8], strides = [1, 1]} : vector<2x8xf32> to vector<1x8xf32>
    %217 = vector.extract_strided_slice %215 {offsets = [0, 0], sizes = [8, 16], strides = [1, 1]} : vector<8x96xf32> to vector<8x16xf32>
    %218 = vector.extract_strided_slice %215 {offsets = [0, 32], sizes = [8, 16], strides = [1, 1]} : vector<8x96xf32> to vector<8x16xf32>
    %219 = vector.extract_strided_slice %215 {offsets = [0, 64], sizes = [8, 16], strides = [1, 1]} : vector<8x96xf32> to vector<8x16xf32>
    %cst_99 = arith.constant dense<0.000000e+00> : vector<8x8xf32>
    %220 = tpu.matmul %217, %218, %cst_99 {dimension_numbers = #tpu.dot_dimension_numbers<[1], [1], [0], [0], [0, 0, 1, 0], [], []>} : vector<8x16xf32>, vector<8x16xf32>, vector<8x8xf32> -> vector<8x8xf32>
    %cst_100 = arith.constant 2.500000e-01 : f32
    %221 = vector.broadcast %cst_100 : f32 to vector<8x8xf32>
    %222 = arith.mulf %220, %221 : vector<8x8xf32>
    %223 = vector.broadcast %216 : vector<1x8xf32> to vector<8x8xf32>
    %224 = arith.addf %222, %223 : vector<8x8xf32>
    %cst_101 = arith.constant dense<0xFF800000> : vector<8xf32>
    %225 = vector.multi_reduction <maximumf>, %224, %cst_101 [1] : vector<8x8xf32> to vector<8xf32>
    %226 = vector.shape_cast %225 : vector<8xf32> to vector<8x1xf32>
    %227 = vector.broadcast %226 : vector<8x1xf32> to vector<8x8xf32>
    %228 = arith.subf %224, %227 : vector<8x8xf32>
    %229 = math.exp %228 : vector<8x8xf32>
    %cst_102 = arith.constant dense<0.000000e+00> : vector<8xf32>
    %230 = vector.multi_reduction <add>, %229, %cst_102 [1] : vector<8x8xf32> to vector<8xf32>
    %231 = vector.shape_cast %230 : vector<8xf32> to vector<8x1xf32>
    %232 = vector.broadcast %231 : vector<8x1xf32> to vector<8x8xf32>
    %233 = arith.divf %229, %232 : vector<8x8xf32>
    %cst_103 = arith.constant dense<0.000000e+00> : vector<8x16xf32>
    %234 = tpu.matmul %233, %219, %cst_103 {dimension_numbers = #tpu.dot_dimension_numbers<[1], [0], [0], [1], [0, 0, 1, 1], [], []>} : vector<8x8xf32>, vector<8x16xf32>, vector<8x16xf32> -> vector<8x16xf32>
    %c0_104 = arith.constant 0 : index
    %c0_105 = arith.constant 0 : index
    %235 = vector.load %arg19[%c0_104, %c0_105] : memref<16x32xf32, #tpu.memory_space<vmem>>, vector<8x16xf32>
    tpu.vector_store %arg19[%c0_104, %c0_105], %234 {strides = array<i32>} : memref<16x32xf32, #tpu.memory_space<vmem>>, vector<8x16xf32>,
    %236 = vector.extract_strided_slice %215 {offsets = [0, 16], sizes = [8, 16], strides = [1, 1]} : vector<8x96xf32> to vector<8x16xf32>
    %237 = vector.extract_strided_slice %215 {offsets = [0, 48], sizes = [8, 16], strides = [1, 1]} : vector<8x96xf32> to vector<8x16xf32>
    %238 = vector.extract_strided_slice %215 {offsets = [0, 80], sizes = [8, 16], strides = [1, 1]} : vector<8x96xf32> to vector<8x16xf32>
    %cst_106 = arith.constant dense<0.000000e+00> : vector<8x8xf32>
    %239 = tpu.matmul %236, %237, %cst_106 {dimension_numbers = #tpu.dot_dimension_numbers<[1], [1], [0], [0], [0, 0, 1, 0], [], []>} : vector<8x16xf32>, vector<8x16xf32>, vector<8x8xf32> -> vector<8x8xf32>
    %cst_107 = arith.constant 2.500000e-01 : f32
    %240 = vector.broadcast %cst_107 : f32 to vector<8x8xf32>
    %241 = arith.mulf %239, %240 : vector<8x8xf32>
    %242 = vector.broadcast %216 : vector<1x8xf32> to vector<8x8xf32>
    %243 = arith.addf %241, %242 : vector<8x8xf32>
    %cst_108 = arith.constant dense<0xFF800000> : vector<8xf32>
    %244 = vector.multi_reduction <maximumf>, %243, %cst_108 [1] : vector<8x8xf32> to vector<8xf32>
    %245 = vector.shape_cast %244 : vector<8xf32> to vector<8x1xf32>
    %246 = vector.broadcast %245 : vector<8x1xf32> to vector<8x8xf32>
    %247 = arith.subf %243, %246 : vector<8x8xf32>
    %248 = math.exp %247 : vector<8x8xf32>
    %cst_109 = arith.constant dense<0.000000e+00> : vector<8xf32>
    %249 = vector.multi_reduction <add>, %248, %cst_109 [1] : vector<8x8xf32> to vector<8xf32>
    %250 = vector.shape_cast %249 : vector<8xf32> to vector<8x1xf32>
    %251 = vector.broadcast %250 : vector<8x1xf32> to vector<8x8xf32>
    %252 = arith.divf %248, %251 : vector<8x8xf32>
    %cst_110 = arith.constant dense<0.000000e+00> : vector<8x16xf32>
    %253 = tpu.matmul %252, %238, %cst_110 {dimension_numbers = #tpu.dot_dimension_numbers<[1], [0], [0], [1], [0, 0, 1, 1], [], []>} : vector<8x8xf32>, vector<8x16xf32>, vector<8x16xf32> -> vector<8x16xf32>
    %c0_111 = arith.constant 0 : index
    %c16_112 = arith.constant 16 : index
    %254 = vector.load %arg19[%c0_111, %c16_112] : memref<16x32xf32, #tpu.memory_space<vmem>>, vector<8x16xf32>
    tpu.vector_store %arg19[%c0_111, %c16_112], %253 {strides = array<i32>} : memref<16x32xf32, #tpu.memory_space<vmem>>, vector<8x16xf32>,
    %255 = vector.extract_strided_slice %214 {offsets = [8, 0], sizes = [8, 96], strides = [1, 1]} : vector<16x96xf32> to vector<8x96xf32>
    %256 = vector.extract_strided_slice %27 {offsets = [1, 0], sizes = [1, 8], strides = [1, 1]} : vector<2x8xf32> to vector<1x8xf32>
    %257 = vector.extract_strided_slice %255 {offsets = [0, 0], sizes = [8, 16], strides = [1, 1]} : vector<8x96xf32> to vector<8x16xf32>
    %258 = vector.extract_strided_slice %255 {offsets = [0, 32], sizes = [8, 16], strides = [1, 1]} : vector<8x96xf32> to vector<8x16xf32>
    %259 = vector.extract_strided_slice %255 {offsets = [0, 64], sizes = [8, 16], strides = [1, 1]} : vector<8x96xf32> to vector<8x16xf32>
    %cst_113 = arith.constant dense<0.000000e+00> : vector<8x8xf32>
    %260 = tpu.matmul %257, %258, %cst_113 {dimension_numbers = #tpu.dot_dimension_numbers<[1], [1], [0], [0], [0, 0, 1, 0], [], []>} : vector<8x16xf32>, vector<8x16xf32>, vector<8x8xf32> -> vector<8x8xf32>
    %cst_114 = arith.constant 2.500000e-01 : f32
    %261 = vector.broadcast %cst_114 : f32 to vector<8x8xf32>
    %262 = arith.mulf %260, %261 : vector<8x8xf32>
    %263 = vector.broadcast %256 : vector<1x8xf32> to vector<8x8xf32>
    %264 = arith.addf %262, %263 : vector<8x8xf32>
    %cst_115 = arith.constant dense<0xFF800000> : vector<8xf32>
    %265 = vector.multi_reduction <maximumf>, %264, %cst_115 [1] : vector<8x8xf32> to vector<8xf32>
    %266 = vector.shape_cast %265 : vector<8xf32> to vector<8x1xf32>
    %267 = vector.broadcast %266 : vector<8x1xf32> to vector<8x8xf32>
    %268 = arith.subf %264, %267 : vector<8x8xf32>
    %269 = math.exp %268 : vector<8x8xf32>
    %cst_116 = arith.constant dense<0.000000e+00> : vector<8xf32>
    %270 = vector.multi_reduction <add>, %269, %cst_116 [1] : vector<8x8xf32> to vector<8xf32>
    %271 = vector.shape_cast %270 : vector<8xf32> to vector<8x1xf32>
    %272 = vector.broadcast %271 : vector<8x1xf32> to vector<8x8xf32>
    %273 = arith.divf %269, %272 : vector<8x8xf32>
    %cst_117 = arith.constant dense<0.000000e+00> : vector<8x16xf32>
    %274 = tpu.matmul %273, %259, %cst_117 {dimension_numbers = #tpu.dot_dimension_numbers<[1], [0], [0], [1], [0, 0, 1, 1], [], []>} : vector<8x8xf32>, vector<8x16xf32>, vector<8x16xf32> -> vector<8x16xf32>
    %c8_118 = arith.constant 8 : index
    %c0_119 = arith.constant 0 : index
    %275 = vector.load %arg19[%c8_118, %c0_119] : memref<16x32xf32, #tpu.memory_space<vmem>>, vector<8x16xf32>
    tpu.vector_store %arg19[%c8_118, %c0_119], %274 {strides = array<i32>} : memref<16x32xf32, #tpu.memory_space<vmem>>, vector<8x16xf32>,
    %276 = vector.extract_strided_slice %255 {offsets = [0, 16], sizes = [8, 16], strides = [1, 1]} : vector<8x96xf32> to vector<8x16xf32>
    %277 = vector.extract_strided_slice %255 {offsets = [0, 48], sizes = [8, 16], strides = [1, 1]} : vector<8x96xf32> to vector<8x16xf32>
    %278 = vector.extract_strided_slice %255 {offsets = [0, 80], sizes = [8, 16], strides = [1, 1]} : vector<8x96xf32> to vector<8x16xf32>
    %cst_120 = arith.constant dense<0.000000e+00> : vector<8x8xf32>
    %279 = tpu.matmul %276, %277, %cst_120 {dimension_numbers = #tpu.dot_dimension_numbers<[1], [1], [0], [0], [0, 0, 1, 0], [], []>} : vector<8x16xf32>, vector<8x16xf32>, vector<8x8xf32> -> vector<8x8xf32>
    %cst_121 = arith.constant 2.500000e-01 : f32
    %280 = vector.broadcast %cst_121 : f32 to vector<8x8xf32>
    %281 = arith.mulf %279, %280 : vector<8x8xf32>
    %282 = vector.broadcast %256 : vector<1x8xf32> to vector<8x8xf32>
    %283 = arith.addf %281, %282 : vector<8x8xf32>
    %cst_122 = arith.constant dense<0xFF800000> : vector<8xf32>
    %284 = vector.multi_reduction <maximumf>, %283, %cst_122 [1] : vector<8x8xf32> to vector<8xf32>
    %285 = vector.shape_cast %284 : vector<8xf32> to vector<8x1xf32>
    %286 = vector.broadcast %285 : vector<8x1xf32> to vector<8x8xf32>
    %287 = arith.subf %283, %286 : vector<8x8xf32>
    %288 = math.exp %287 : vector<8x8xf32>
    %cst_123 = arith.constant dense<0.000000e+00> : vector<8xf32>
    %289 = vector.multi_reduction <add>, %288, %cst_123 [1] : vector<8x8xf32> to vector<8xf32>
    %290 = vector.shape_cast %289 : vector<8xf32> to vector<8x1xf32>
    %291 = vector.broadcast %290 : vector<8x1xf32> to vector<8x8xf32>
    %292 = arith.divf %288, %291 : vector<8x8xf32>
    %cst_124 = arith.constant dense<0.000000e+00> : vector<8x16xf32>
    %293 = tpu.matmul %292, %278, %cst_124 {dimension_numbers = #tpu.dot_dimension_numbers<[1], [0], [0], [1], [0, 0, 1, 1], [], []>} : vector<8x8xf32>, vector<8x16xf32>, vector<8x16xf32> -> vector<8x16xf32>
    %c8_125 = arith.constant 8 : index
    %c16_126 = arith.constant 16 : index
    %294 = vector.load %arg19[%c8_125, %c16_126] : memref<16x32xf32, #tpu.memory_space<vmem>>, vector<8x16xf32>
    tpu.vector_store %arg19[%c8_125, %c16_126], %293 {strides = array<i32>} : memref<16x32xf32, #tpu.memory_space<vmem>>, vector<8x16xf32>,
    %c0_127 = arith.constant 0 : index
    %c0_128 = arith.constant 0 : index
    %295 = vector.load %arg19[%c0_127, %c0_128] : memref<16x32xf32, #tpu.memory_space<vmem>>, vector<16x32xf32>
    %c1_129 = arith.constant 1 : index
    %c0_130 = arith.constant 0 : index
    %c0_131 = arith.constant 0 : index
    %296 = vector.load %arg8[%c1_129, %c0_130, %c0_131] : memref<2x32x32xf32, #tpu.memory_space<vmem>>, vector<1x32x32xf32>
    %297 = vector.shape_cast %296 : vector<1x32x32xf32> to vector<32x32xf32>
    %cst_132 = arith.constant dense<0.000000e+00> : vector<16x32xf32>
    %298 = tpu.matmul %295, %297, %cst_132 {dimension_numbers = #tpu.dot_dimension_numbers<[1], [0], [0], [1], [0, 0, 1, 1], [], []>} : vector<16x32xf32>, vector<32x32xf32>, vector<16x32xf32> -> vector<16x32xf32>
    %c1_133 = arith.constant 1 : index
    %c0_134 = arith.constant 0 : index
    %c0_135 = arith.constant 0 : index
    %299 = vector.load %arg9[%c1_133, %c0_134, %c0_135] : memref<2x1x32xf32, #tpu.memory_space<vmem>>, vector<1x1x32xf32>
    %300 = vector.shape_cast %299 : vector<1x1x32xf32> to vector<1x32xf32>
    %301 = vector.broadcast %300 : vector<1x32xf32> to vector<16x32xf32>
    %302 = arith.addf %298, %301 : vector<16x32xf32>
    %303 = arith.addf %302, %207 : vector<16x32xf32>
    %c1_136 = arith.constant 1 : index
    %c0_137 = arith.constant 0 : index
    %c0_138 = arith.constant 0 : index
    %304 = vector.load %arg10[%c1_136, %c0_137, %c0_138] : memref<2x1x32xf32, #tpu.memory_space<vmem>>, vector<1x1x32xf32>
    %305 = vector.shape_cast %304 : vector<1x1x32xf32> to vector<1x32xf32>
    %c1_139 = arith.constant 1 : index
    %c0_140 = arith.constant 0 : index
    %c0_141 = arith.constant 0 : index
    %306 = vector.load %arg11[%c1_139, %c0_140, %c0_141] : memref<2x1x32xf32, #tpu.memory_space<vmem>>, vector<1x1x32xf32>
    %307 = vector.shape_cast %306 : vector<1x1x32xf32> to vector<1x32xf32>
    %cst_142 = arith.constant dense<0.000000e+00> : vector<16xf32>
    %308 = vector.multi_reduction <add>, %303, %cst_142 [1] : vector<16x32xf32> to vector<16xf32>
    %309 = vector.shape_cast %308 : vector<16xf32> to vector<16x1xf32>
    %cst_143 = arith.constant 3.200000e+01 : f32
    %310 = vector.broadcast %cst_143 : f32 to vector<16x1xf32>
    %311 = arith.divf %309, %310 : vector<16x1xf32>
    %312 = vector.broadcast %311 : vector<16x1xf32> to vector<16x32xf32>
    %313 = arith.subf %303, %312 : vector<16x32xf32>
    %314 = vector.broadcast %311 : vector<16x1xf32> to vector<16x32xf32>
    %315 = arith.subf %303, %314 : vector<16x32xf32>
    %316 = arith.mulf %313, %315 : vector<16x32xf32>
    %cst_144 = arith.constant dense<0.000000e+00> : vector<16xf32>
    %317 = vector.multi_reduction <add>, %316, %cst_144 [1] : vector<16x32xf32> to vector<16xf32>
    %318 = vector.shape_cast %317 : vector<16xf32> to vector<16x1xf32>
    %cst_145 = arith.constant 3.200000e+01 : f32
    %319 = vector.broadcast %cst_145 : f32 to vector<16x1xf32>
    %320 = arith.divf %318, %319 : vector<16x1xf32>
    %321 = vector.broadcast %311 : vector<16x1xf32> to vector<16x32xf32>
    %322 = arith.subf %303, %321 : vector<16x32xf32>
    %cst_146 = arith.constant 9.99999996E-13 : f32
    %323 = vector.broadcast %cst_146 : f32 to vector<16x1xf32>
    %324 = arith.addf %320, %323 : vector<16x1xf32>
    %325 = math.rsqrt %324 : vector<16x1xf32>
    %326 = vector.broadcast %325 : vector<16x1xf32> to vector<16x32xf32>
    %327 = arith.mulf %322, %326 : vector<16x32xf32>
    %328 = vector.broadcast %305 : vector<1x32xf32> to vector<16x32xf32>
    %329 = arith.mulf %327, %328 : vector<16x32xf32>
    %330 = vector.broadcast %307 : vector<1x32xf32> to vector<16x32xf32>
    %331 = arith.addf %329, %330 : vector<16x32xf32>
    %c1_147 = arith.constant 1 : index
    %c0_148 = arith.constant 0 : index
    %c0_149 = arith.constant 0 : index
    %332 = vector.load %arg12[%c1_147, %c0_148, %c0_149] : memref<2x32x64xf32, #tpu.memory_space<vmem>>, vector<1x32x64xf32>
    %333 = vector.shape_cast %332 : vector<1x32x64xf32> to vector<32x64xf32>
    %cst_150 = arith.constant dense<0.000000e+00> : vector<16x64xf32>
    %334 = tpu.matmul %331, %333, %cst_150 {dimension_numbers = #tpu.dot_dimension_numbers<[1], [0], [0], [1], [0, 0, 1, 1], [], []>} : vector<16x32xf32>, vector<32x64xf32>, vector<16x64xf32> -> vector<16x64xf32>
    %c1_151 = arith.constant 1 : index
    %c0_152 = arith.constant 0 : index
    %c0_153 = arith.constant 0 : index
    %335 = vector.load %arg13[%c1_151, %c0_152, %c0_153] : memref<2x1x64xf32, #tpu.memory_space<vmem>>, vector<1x1x64xf32>
    %336 = vector.shape_cast %335 : vector<1x1x64xf32> to vector<1x64xf32>
    %337 = vector.broadcast %336 : vector<1x64xf32> to vector<16x64xf32>
    %338 = arith.addf %334, %337 : vector<16x64xf32>
    %cst_154 = arith.constant 5.000000e-01 : f32
    %339 = vector.broadcast %cst_154 : f32 to vector<16x64xf32>
    %340 = arith.mulf %339, %338 : vector<16x64xf32>
    %cst_155 = arith.constant 4.471500e-02 : f32
    %341 = vector.broadcast %cst_155 : f32 to vector<16x64xf32>
    %342 = arith.mulf %341, %338 : vector<16x64xf32>
    %343 = arith.mulf %342, %338 : vector<16x64xf32>
    %344 = arith.mulf %343, %338 : vector<16x64xf32>
    %345 = arith.addf %338, %344 : vector<16x64xf32>
    %cst_156 = arith.constant 0.797884583 : f32
    %346 = vector.broadcast %cst_156 : f32 to vector<16x64xf32>
    %347 = arith.mulf %346, %345 : vector<16x64xf32>
    %348 = math.tanh %347 : vector<16x64xf32>
    %cst_157 = arith.constant 1.000000e+00 : f32
    %349 = vector.broadcast %cst_157 : f32 to vector<16x64xf32>
    %350 = arith.addf %349, %348 : vector<16x64xf32>
    %351 = arith.mulf %340, %350 : vector<16x64xf32>
    %c1_158 = arith.constant 1 : index
    %c0_159 = arith.constant 0 : index
    %c0_160 = arith.constant 0 : index
    %352 = vector.load %arg14[%c1_158, %c0_159, %c0_160] : memref<2x64x32xf32, #tpu.memory_space<vmem>>, vector<1x64x32xf32>
    %353 = vector.shape_cast %352 : vector<1x64x32xf32> to vector<64x32xf32>
    %cst_161 = arith.constant dense<0.000000e+00> : vector<16x32xf32>
    %354 = tpu.matmul %351, %353, %cst_161 {dimension_numbers = #tpu.dot_dimension_numbers<[1], [0], [0], [1], [0, 0, 1, 1], [], []>} : vector<16x64xf32>, vector<64x32xf32>, vector<16x32xf32> -> vector<16x32xf32>
    %c1_162 = arith.constant 1 : index
    %c0_163 = arith.constant 0 : index
    %c0_164 = arith.constant 0 : index
    %355 = vector.load %arg15[%c1_162, %c0_163, %c0_164] : memref<2x1x32xf32, #tpu.memory_space<vmem>>, vector<1x1x32xf32>
    %356 = vector.shape_cast %355 : vector<1x1x32xf32> to vector<1x32xf32>
    %357 = vector.broadcast %356 : vector<1x32xf32> to vector<16x32xf32>
    %358 = arith.addf %354, %357 : vector<16x32xf32>
    %359 = arith.addf %358, %331 : vector<16x32xf32>
    %c1_165 = arith.constant 1 : index
    %c0_166 = arith.constant 0 : index
    %c0_167 = arith.constant 0 : index
    %360 = vector.load %arg16[%c1_165, %c0_166, %c0_167] : memref<2x1x32xf32, #tpu.memory_space<vmem>>, vector<1x1x32xf32>
    %361 = vector.shape_cast %360 : vector<1x1x32xf32> to vector<1x32xf32>
    %c1_168 = arith.constant 1 : index
    %c0_169 = arith.constant 0 : index
    %c0_170 = arith.constant 0 : index
    %362 = vector.load %arg17[%c1_168, %c0_169, %c0_170] : memref<2x1x32xf32, #tpu.memory_space<vmem>>, vector<1x1x32xf32>
    %363 = vector.shape_cast %362 : vector<1x1x32xf32> to vector<1x32xf32>
    %cst_171 = arith.constant dense<0.000000e+00> : vector<16xf32>
    %364 = vector.multi_reduction <add>, %359, %cst_171 [1] : vector<16x32xf32> to vector<16xf32>
    %365 = vector.shape_cast %364 : vector<16xf32> to vector<16x1xf32>
    %cst_172 = arith.constant 3.200000e+01 : f32
    %366 = vector.broadcast %cst_172 : f32 to vector<16x1xf32>
    %367 = arith.divf %365, %366 : vector<16x1xf32>
    %368 = vector.broadcast %367 : vector<16x1xf32> to vector<16x32xf32>
    %369 = arith.subf %359, %368 : vector<16x32xf32>
    %370 = vector.broadcast %367 : vector<16x1xf32> to vector<16x32xf32>
    %371 = arith.subf %359, %370 : vector<16x32xf32>
    %372 = arith.mulf %369, %371 : vector<16x32xf32>
    %cst_173 = arith.constant dense<0.000000e+00> : vector<16xf32>
    %373 = vector.multi_reduction <add>, %372, %cst_173 [1] : vector<16x32xf32> to vector<16xf32>
    %374 = vector.shape_cast %373 : vector<16xf32> to vector<16x1xf32>
    %cst_174 = arith.constant 3.200000e+01 : f32
    %375 = vector.broadcast %cst_174 : f32 to vector<16x1xf32>
    %376 = arith.divf %374, %375 : vector<16x1xf32>
    %377 = vector.broadcast %367 : vector<16x1xf32> to vector<16x32xf32>
    %378 = arith.subf %359, %377 : vector<16x32xf32>
    %cst_175 = arith.constant 9.99999996E-13 : f32
    %379 = vector.broadcast %cst_175 : f32 to vector<16x1xf32>
    %380 = arith.addf %376, %379 : vector<16x1xf32>
    %381 = math.rsqrt %380 : vector<16x1xf32>
    %382 = vector.broadcast %381 : vector<16x1xf32> to vector<16x32xf32>
    %383 = arith.mulf %378, %382 : vector<16x32xf32>
    %384 = vector.broadcast %361 : vector<1x32xf32> to vector<16x32xf32>
    %385 = arith.mulf %383, %384 : vector<16x32xf32>
    %386 = vector.broadcast %363 : vector<1x32xf32> to vector<16x32xf32>
    %387 = arith.addf %385, %386 : vector<16x32xf32>
    %c0_176 = arith.constant 0 : index
    %c0_177 = arith.constant 0 : index
    %c0_178 = arith.constant 0 : index
    %388 = vector.load %arg3[%c0_176, %c0_177, %c0_178] : memref<2x8x8xf32, #tpu.memory_space<vmem>>, vector<1x8x8xf32>
    %389 = vector.shape_cast %388 : vector<1x8x8xf32> to vector<8x8xf32>
    %390 = vector.extract_strided_slice %387 {offsets = [0, 0], sizes = [8, 32], strides = [1, 1]} : vector<16x32xf32> to vector<8x32xf32>
    %cst_179 = arith.constant dense<0.000000e+00> : vector<8x32xf32>
    %391 = tpu.matmul %389, %390, %cst_179 {dimension_numbers = #tpu.dot_dimension_numbers<[1], [0], [0], [1], [0, 0, 1, 1], [], []>} : vector<8x8xf32>, vector<8x32xf32>, vector<8x32xf32> -> vector<8x32xf32>
    %c0_180 = arith.constant 0 : index
    %c0_181 = arith.constant 0 : index
    %c0_182 = arith.constant 0 : index
    %392 = vector.load %arg18[%c0_180, %c0_181, %c0_182] : memref<2x8x32xf32, #tpu.memory_space<vmem>>, vector<1x8x32xf32>
    %393 = vector.shape_cast %392 : vector<1x8x32xf32> to vector<8x32xf32>
    %394 = vector.shape_cast %391 : vector<8x32xf32> to vector<1x8x32xf32>
    tpu.vector_store %arg18[%c0_180, %c0_181, %c0_182], %394 {strides = array<i32>} : memref<2x8x32xf32, #tpu.memory_space<vmem>>, vector<1x8x32xf32>,
    %c1_183 = arith.constant 1 : index
    %c0_184 = arith.constant 0 : index
    %c0_185 = arith.constant 0 : index
    %395 = vector.load %arg3[%c1_183, %c0_184, %c0_185] : memref<2x8x8xf32, #tpu.memory_space<vmem>>, vector<1x8x8xf32>
    %396 = vector.shape_cast %395 : vector<1x8x8xf32> to vector<8x8xf32>
    %397 = vector.extract_strided_slice %387 {offsets = [8, 0], sizes = [8, 32], strides = [1, 1]} : vector<16x32xf32> to vector<8x32xf32>
    %cst_186 = arith.constant dense<0.000000e+00> : vector<8x32xf32>
    %398 = tpu.matmul %396, %397, %cst_186 {dimension_numbers = #tpu.dot_dimension_numbers<[1], [0], [0], [1], [0, 0, 1, 1], [], []>} : vector<8x8xf32>, vector<8x32xf32>, vector<8x32xf32> -> vector<8x32xf32>
    %c1_187 = arith.constant 1 : index
    %c0_188 = arith.constant 0 : index
    %c0_189 = arith.constant 0 : index
    %399 = vector.load %arg18[%c1_187, %c0_188, %c0_189] : memref<2x8x32xf32, #tpu.memory_space<vmem>>, vector<1x8x32xf32>
    %400 = vector.shape_cast %399 : vector<1x8x32xf32> to vector<8x32xf32>
    %401 = vector.shape_cast %398 : vector<8x32xf32> to vector<1x8x32xf32>
    tpu.vector_store %arg18[%c1_187, %c0_188, %c0_189], %401 {strides = array<i32>} : memref<2x8x32xf32, #tpu.memory_space<vmem>>, vector<1x8x32xf32>,
    return
  }
  func.func @transform_0(%arg0: i32) -> (i32, i32) {
    %c0_i32 = arith.constant 0 : i32
    %c0_i32_0 = arith.constant 0 : i32
    %c0_i32_1 = arith.constant 0 : i32
    return %c0_i32, %c0_i32_0 : i32, i32
  }
  func.func @transform_1(%arg0: i32) -> (i32, i32) {
    %c0_i32 = arith.constant 0 : i32
    %c0_i32_0 = arith.constant 0 : i32
    %c0_i32_1 = arith.constant 0 : i32
    return %c0_i32, %c0_i32_0 : i32, i32
  }
  func.func @transform_2(%arg0: i32) -> (i32, i32, i32) {
    %c0_i32 = arith.constant 0 : i32
    %c0_i32_0 = arith.constant 0 : i32
    %c0_i32_1 = arith.constant 0 : i32
    %c0_i32_2 = arith.constant 0 : i32
    return %c0_i32, %c0_i32_0, %c0_i32_1 : i32, i32, i32
  }
  func.func @transform_3(%arg0: i32) -> (i32, i32) {
    %c0_i32 = arith.constant 0 : i32
    %c0_i32_0 = arith.constant 0 : i32
    %c0_i32_1 = arith.constant 0 : i32
    return %c0_i32, %c0_i32_0 : i32, i32
  }
  func.func @transform_4(%arg0: i32) -> (i32, i32) {
    %c0_i32 = arith.constant 0 : i32
    %c0_i32_0 = arith.constant 0 : i32
    %c0_i32_1 = arith.constant 0 : i32
    return %c0_i32, %c0_i32_0 : i32, i32
  }
  func.func @transform_5(%arg0: i32) -> (i32, i32, i32) {
    %c0_i32 = arith.constant 0 : i32
    %c0_i32_0 = arith.constant 0 : i32
    %c0_i32_1 = arith.constant 0 : i32
    %c0_i32_2 = arith.constant 0 : i32
    return %c0_i32, %c0_i32_0, %c0_i32_1 : i32, i32, i32
  }
  func.func @transform_6(%arg0: i32) -> (i32, i32, i32) {
    %c0_i32 = arith.constant 0 : i32
    %c0_i32_0 = arith.constant 0 : i32
    %c0_i32_1 = arith.constant 0 : i32
    %c0_i32_2 = arith.constant 0 : i32
    return %c0_i32, %c0_i32_0, %c0_i32_1 : i32, i32, i32
  }
  func.func @transform_7(%arg0: i32) -> (i32, i32, i32) {
    %c0_i32 = arith.constant 0 : i32
    %c0_i32_0 = arith.constant 0 : i32
    %c0_i32_1 = arith.constant 0 : i32
    %c0_i32_2 = arith.constant 0 : i32
    return %c0_i32, %c0_i32_0, %c0_i32_1 : i32, i32, i32
  }
  func.func @transform_8(%arg0: i32) -> (i32, i32, i32) {
    %c0_i32 = arith.constant 0 : i32
    %c0_i32_0 = arith.constant 0 : i32
    %c0_i32_1 = arith.constant 0 : i32
    %c0_i32_2 = arith.constant 0 : i32
    return %c0_i32, %c0_i32_0, %c0_i32_1 : i32, i32, i32
  }
  func.func @transform_9(%arg0: i32) -> (i32, i32, i32) {
    %c0_i32 = arith.constant 0 : i32
    %c0_i32_0 = arith.constant 0 : i32
    %c0_i32_1 = arith.constant 0 : i32
    %c0_i32_2 = arith.constant 0 : i32
    return %c0_i32, %c0_i32_0, %c0_i32_1 : i32, i32, i32
  }
  func.func @transform_10(%arg0: i32) -> (i32, i32, i32) {
    %c0_i32 = arith.constant 0 : i32
    %c0_i32_0 = arith.constant 0 : i32
    %c0_i32_1 = arith.constant 0 : i32
    %c0_i32_2 = arith.constant 0 : i32
    return %c0_i32, %c0_i32_0, %c0_i32_1 : i32, i32, i32
  }
  func.func @transform_11(%arg0: i32) -> (i32, i32, i32) {
    %c0_i32 = arith.constant 0 : i32
    %c0_i32_0 = arith.constant 0 : i32
    %c0_i32_1 = arith.constant 0 : i32
    %c0_i32_2 = arith.constant 0 : i32
    return %c0_i32, %c0_i32_0, %c0_i32_1 : i32, i32, i32
  }
  func.func @transform_12(%arg0: i32) -> (i32, i32, i32) {
    %c0_i32 = arith.constant 0 : i32
    %c0_i32_0 = arith.constant 0 : i32
    %c0_i32_1 = arith.constant 0 : i32
    %c0_i32_2 = arith.constant 0 : i32
    return %c0_i32, %c0_i32_0, %c0_i32_1 : i32, i32, i32
  }
  func.func @transform_13(%arg0: i32) -> (i32, i32, i32) {
    %c0_i32 = arith.constant 0 : i32
    %c0_i32_0 = arith.constant 0 : i32
    %c0_i32_1 = arith.constant 0 : i32
    %c0_i32_2 = arith.constant 0 : i32
    return %c0_i32, %c0_i32_0, %c0_i32_1 : i32, i32, i32
  }
  func.func @transform_14(%arg0: i32) -> (i32, i32, i32) {
    %c0_i32 = arith.constant 0 : i32
    %c0_i32_0 = arith.constant 0 : i32
    %c0_i32_1 = arith.constant 0 : i32
    %c0_i32_2 = arith.constant 0 : i32
    return %c0_i32, %c0_i32_0, %c0_i32_1 : i32, i32, i32
  }
  func.func @transform_15(%arg0: i32) -> (i32, i32, i32) {
    %c0_i32 = arith.constant 0 : i32
    %c0_i32_0 = arith.constant 0 : i32
    %c0_i32_1 = arith.constant 0 : i32
    %c0_i32_2 = arith.constant 0 : i32
    return %c0_i32, %c0_i32_0, %c0_i32_1 : i32, i32, i32
  }
  func.func @transform_16(%arg0: i32) -> (i32, i32, i32) {
    %c0_i32 = arith.constant 0 : i32
    %c0_i32_0 = arith.constant 0 : i32
    %c0_i32_1 = arith.constant 0 : i32
    %c0_i32_2 = arith.constant 0 : i32
    return %c0_i32, %c0_i32_0, %c0_i32_1 : i32, i32, i32
  }
  func.func @transform_17(%arg0: i32) -> (i32, i32, i32) {
    %c0_i32 = arith.constant 0 : i32
    %c0_i32_0 = arith.constant 0 : i32
    %c0_i32_1 = arith.constant 0 : i32
    %c0_i32_2 = arith.constant 0 : i32
    return %c0_i32, %c0_i32_0, %c0_i32_1 : i32, i32, i32
  }
}

</mosaic_0001>

<bundles_post_ra>
// kernel: bert_latin_forward.1
= control target key start
LH: loop header
LB: loop body
LE: loop exit
PB: predicated region body
PF: predicated region fallthrough
CT: control target
= control target key end

     0   :  { %s3700_s0 = inlined_call_operand.vmem [shape: f32[16,32], index: 0, kind: input, shape index: {}]   ;;  %s3701_s1 = inlined_call_operand.vmem [shape: f32[2,8], index: 1, kind: input, shape index: {}]   ;;  %s3702_s2 = inlined_call_operand.vmem [shape: f32[2,8,8], index: 2, kind: input, shape index: {}]   ;;  %s3703_s3 = inlined_call_operand.vmem [shape: f32[1,32], index: 3, kind: input, shape index: {}]   ;;  %s3704_s4 = inlined_call_operand.vmem [shape: f32[1,32], index: 4, kind: input, shape index: {}]   ;;  %s3705_s5 = inlined_call_operand.vmem [shape: f32[2,32,96], index: 5, kind: input, shape index: {}]   ;;  %s3706_s6 = inlined_call_operand.vmem [shape: f32[2,1,96], index: 6, kind: input, shape index: {}]   ;;  %s3707_s7 = inlined_call_operand.vmem [shape: f32[2,32,32], index: 7, kind: input, shape index: {}]   ;;  %s3708_s8 = inlined_call_operand.vmem [shape: f32[2,1,32], index: 8, kind: input, shape index: {}]   ;;  %s3709_s9 = inlined_call_operand.vmem [shape: f32[2,1,32], index: 9, kind: input, shape index: {}]   ;;  %s3710_s10 = inlined_call_operand.vmem [shape: f32[2,1,32], index: 10, kind: input, shape index: {}]   ;;  %s3711_s11 = inlined_call_operand.vmem [shape: f32[2,32,64], index: 11, kind: input, shape index: {}]   ;;  %s3712_s12 = inlined_call_operand.vmem [shape: f32[2,1,64], index: 12, kind: input, shape index: {}]   ;;  %s3713_s13 = inlined_call_operand.vmem [shape: f32[2,64,32], index: 13, kind: input, shape index: {}]   ;;  %s3714_s14 = inlined_call_operand.vmem [shape: f32[2,1,32], index: 14, kind: input, shape index: {}]   ;;  %s3715_s15 = inlined_call_operand.vmem [shape: f32[2,1,32], index: 15, kind: input, shape index: {}]   ;;  %s3716_s16 = inlined_call_operand.vmem [shape: f32[2,1,32], index: 16, kind: input, shape index: {}]   ;;  %s3717_s17 = inlined_call_operand.hbm [shape: f32[2,8,32], index: 17, kind: output, shape index: {}]  }
   0x1   :  { %3719 = sst [smem:[#allocation6_spill]] %s3700_s0 }
   0x2   :  { %3720 = sst [smem:[#allocation7_spill]] %s3701_s1 }
   0x3   :  { %s3721_s26 = sld [smem:[#allocation6_spill]]  ;;  %vm61_vm0 = vcmask 261120  }
   0x9   :  { %v57_v0 = vld [vmem:[%s3721_s26] sm:$0xff]  ;;  %v58_v1 = vld [vmem:[%s3721_s26 + $0x8] sm:$0xff] }
   0xa   :  { %22 = vsyncpa [#allocation4], 0  ;;  %v62_v2 = vsel %vm61_vm0, %v57_v0, 0.0  ;;  %v65_v3 = vsel %vm61_vm0, %v58_v1, 0.0  ;;  %v106_v14 = vld [vmem:[%s3705_s5] sm:$0xff]  ;;  %v107_v15 = vld [vmem:[%s3705_s5 + $0x8] sm:$0xff]  ;;  %v277_v45 = vlaneseq }
   0xb   :  { %63 = vadd.xlane.f32.xlu0 %v62_v2  ;;  %v108_v16 = vld [vmem:[%s3705_s5 + $0x10] sm:$0xff]  ;;  %v2997_v17 = vpack.c.bf16 %v107_v15, %v106_v14  ;;  %v109_v18 = vld [vmem:[%s3705_s5 + $0x18] sm:$0xff]  ;;  %v2622_v27 = vld [vmem:[%s3703_s3] ss:$0 sm:$0xff]  ;;  %v3172_v36 = vmov 0.0   ;;  %vm3173_vm1 = vmmov 0  }
   0xc   :  { %v3001_v19 = vpack.c.bf16 %v109_v18, %v108_v16  ;;  %v2623_v29 = vld [vmem:[%s3704_s4] ss:$0 sm:$0xff]  ;;  %2814 = vmatprep.subr.mxu1 %v3172_v36  ;;  %2816 = vmatprep.mubr.msk.f32.mxu1 %vm3173_vm1, %v3172_v36  ;;  %s3174_s26 = smov 96   ;;  %s3175_s27 = smov 80   ;;  %vm201_vm2 = vcmask 130048   ;;  %v278_v46 = vshrl.u32 %v277_v45, 7 }
   0xd   :  { %2998 = vmatprep.subr.bf16.mxu0 %v2997_v17  ;;  %v2624_v37 = vld [vmem:[%s3706_s6] ss:$0 sm:$0xff]  ;;  %s3176_s28 = smov 112   ;;  %s3722_s30 = sld [smem:[#allocation7_spill]]  ;;  %vm282_vm3 = vcmask 64512   ;;  %vm542_vm4 = vcmask 261248  }
   0xe   :  { %3000 = vmatpush3.bf16.msra.mxu0 %v2997_v17  ;;  %v279_v47 = vsub.s32 0, %v278_v46  ;;  %v624_v54 = vsub.s32 1, %v278_v46  ;;  %s3177_s18 = smov 64   ;;  %s3178_s19 = smov 48   ;;  %vm1152_vm5 = vcmask 523264  }
   0xf   :  { %66 = vadd.xlane.f32.xlu0 %v65_v3  ;;  %3002 = vmatprep.subr.bf16.mxu0 %v3001_v19  ;;  %s3179_s4 = smov 16  }
  0x12   :  { %3004 = vmatpush3.bf16.msra.mxu0 %v3001_v19 }
  0x13   :  { %2834 = vmatprep.subr.mxu0 %v3172_v36  ;;  %v105_v48 = vld [vmem:[%s3722_s30] sm:$0x3] }
  0x14   :  { %v3345_v49 = vrot.slane %v105_v48, %v279_v47  ;;  %v3349_v56 = vrot.slane %v105_v48, %v624_v54  ;;  %v890_v54 = vld [vmem:[%s3707_s7 + $0x8] sm:$0xff] }
  0x98   :  { %v64_v4 = vpop.xlane.xlu0 %63 }
  0x99   :  { %v69_v5 = vmul.f32 0.03125, %v64_v4 }
  0x9b   :  { %v71_v6 = vsub.f32 %v57_v0, %v69_v5 }
  0x9c   :  { %v67_v7 = vpop.xlane.xlu0 %66 }
  0x9d   :  { %v70_v8 = vmul.f32 0.03125, %v67_v7  ;;  %v73_v9 = vmul.f32 %v71_v6, %v71_v6 }
  0x9f   :  { %v72_v10 = vsub.f32 %v58_v1, %v70_v8  ;;  %v75_v11 = vsel %vm61_vm0, %v73_v9, 0.0 }
  0xa0   :  { %76 = vadd.xlane.f32.xlu1 %v75_v11 }
  0xa1   :  { %v74_v12 = vmul.f32 %v72_v10, %v72_v10 }
  0xa3   :  { %v78_v13 = vsel %vm61_vm0, %v74_v12, 0.0 }
  0xa4   :  { %79 = vadd.xlane.f32.xlu1 %v78_v13 }
 0x12d   :  { %v77_v20 = vpop.xlane.xlu1 %76 }
 0x12e   :  { %v81_v21 = vmul.f32 0.03125, %v77_v20 }
 0x130   :  { %v83_v22 = vadd.f32 1e-12, %v81_v21 }
 0x131   :  { %v80_v23 = vpop.xlane.xlu1 %79 }
 0x132   :  { %3088 = vrsqrt.f32 %v83_v22  ;;  %v82_v24 = vmul.f32 0.03125, %v80_v23 }
 0x134   :  { %v84_v25 = vadd.f32 1e-12, %v82_v24 }
 0x136   :  { %3090 = vrsqrt.f32 %v84_v25 }
 0x13c   :  { %v3089_v26 = vpop.eup %3088 }
 0x13d   :  { %v87_v28 = vmul.f32 %v3089_v26, %v71_v6 }
 0x13f   :  { %v95_v30 = vmul.f32 %v2622_v27, %v87_v28 }
 0x140   :  { %v3091_v31 = vpop.eup %3090 }
 0x141   :  { %v88_v32 = vmul.f32 %v3091_v31, %v72_v10  ;;  %v3301_v33 = vadd.f32 %v2623_v29, %v95_v30 }
 0x143   :  { %v96_v34 = vmul.f32 %v2622_v27, %v88_v32  ;;  %2811 = vmatprep.mubr.msk.f32.mxu0 %vm61_vm0, %v3301_v33 }
 0x145   :  { %v3305_v35 = vadd.f32 %v2623_v29, %v96_v34 }
 0x147   :  { %2812 = vmatmul.mubr.msk.f32.vlgmr.msra.gmra.mrb[0].mxu0 %vm61_vm0, %v3305_v35 }
 0x148   :  { %2836 = vmatprep.mubr.msk.f32.mxu0 %vm3173_vm1, %v3172_v36 }
 0x21a   :  { %v2813_v38 = vpop.f32.mrb[0].mxu0 }
 0x21b   :  { %v189_v39 = vpop.f32.mrb[1].mxu0  ;;  %v3324_v41 = vadd.f32 %v2813_v38, %v2624_v37 }
 0x21c   :  { %v3318_v40 = vadd.f32 %v2624_v37, %v189_v39 }
 0x21e   :  { %199 = vrot.lane.b32.xlu0 %v3318_v40, %s3174_s26 }
 0x222   :  { %373 = vrot.lane.b32.xlu0 %v3318_v40, %s3175_s27 }
 0x226   :  { %545 = vrot.lane.b32.xlu0 %v3324_v41, %s3174_s26 }
 0x22a   :  { %715 = vrot.lane.b32.xlu0 %v3324_v41, %s3176_s28 }
 0x290   :  { %v200_v42 = vpop.permute.xlu0 %199 }
 0x291   :  { %2815 = vmatpush3.xpose.msk.msra.mxu1 %vm201_vm2, %v200_v42 }
 0x292   :  { %2819 = vmatprep.subr.mxu1 %v3172_v36 }
 0x294   :  { %2817 = vmatmul.mubr.msk.f32.vlgmr.msra.gmra.mrb[0].mxu1 %vm201_vm2, %v3318_v40  ;;  %v374_v43 = vpop.permute.xlu0 %373 }
 0x295   :  { %2821 = vmatprep.mubr.msk.f32.mxu1 %vm3173_vm1, %v3172_v36 }
 0x298   :  { %v546_v44 = vpop.permute.xlu0 %545 }
 0x299   :  { %2835 = vmatpush3.xpose.msk.msra.mxu0 %vm201_vm2, %v546_v44 }
 0x29a   :  { %2844 = vmatprep.subr.mxu0 %v3172_v36 }
 0x29c   :  { %2837 = vmatmul.mubr.msk.f32.vlgmr.msra.gmra.mrb[2].mxu0 %vm201_vm2, %v3324_v41  ;;  %v716_v7 = vpop.permute.xlu0 %715 }
 0x29d   :  { %2846 = vmatprep.mubr.msk.f32.mxu0 %vm3173_vm1, %v3172_v36 }
 0x367   :  { %v272_v50 = vpop.f32.mrb[0].mxu1 }
 0x368   :  { %v276_v51 = vmul.f32 0.25, %v272_v50  ;;  %v2818_v52 = vpop.f32.mrb[1].mxu1 }
 0x36a   :  { %v281_v53 = vadd.f32 %v3345_v49, %v276_v51 }
 0x36c   :  { %v283_v55 = vsel %vm282_vm3, %v281_v53, -inf }
 0x36d   :  { %284 = vmax.xlane.f32.xlu1 %v283_v55 }
 0x36f   :  { %v617_v57 = vpop.f32.mrb[2].mxu0 }
 0x370   :  { %v621_v58 = vmul.f32 0.25, %v617_v57  ;;  %v2838_v59 = vpop.f32.mrb[3].mxu0  ;;  %v891_v57 = vld [vmem:[%s3707_s7 + $0x10] sm:$0xff] }
 0x372   :  { %v626_v60 = vadd.f32 %v3349_v56, %v621_v58  ;;  %v892_v58 = vld [vmem:[%s3707_s7 + $0x18] sm:$0xff] }
 0x373   :  { %v3009_v59 = vpack.c.bf16 %v892_v58, %v891_v57  ;;  %v1142_v57 = vld [vmem:[%s3713_s13 + $0x28] sm:$0xff] }
 0x374   :  { %v627_v61 = vsel %vm282_vm3, %v626_v60, -inf }
 0x375   :  { %628 = vmax.xlane.f32.xlu0 %v627_v61 }
 0x37e   :  { %294 = vrot.lane.b32.xlu1 %v3318_v40, %s3177_s18 }
 0x382   :  { %371 = vrot.lane.b32.xlu1 %v3318_v40, %s3176_s28 }
 0x3fa   :  { %v285_v62 = vpop.xlane.xlu1 %284 }
 0x3fb   :  { %v286_v63 = vsub.f32 %v281_v53, %v285_v62  ;;  %v889_v53 = vld [vmem:[%s3707_s7] sm:$0xff] }
 0x3fc   :  { %v3005_v55 = vpack.c.bf16 %v890_v54, %v889_v53  ;;  %v1140_v53 = vld [vmem:[%s3713_s13 + $0x18] sm:$0xff] }
 0x3fd   :  { %v287_v0 = vmul.f32 1.442695, %v286_v63 }
 0x3fe   :  { %v295_v1 = vpop.permute.xlu1 %294 }
 0x3ff   :  { %3092 = vpow2.f32 %v287_v0  ;;  %2820 = vmatpush3.msra.mxu1 %v295_v1 }
 0x400   :  { %2824 = vmatprep.subr.mxu1 %v3172_v36 }
 0x402   :  { %v372_v4 = vpop.permute.xlu1 %371  ;;  %v629_v10 = vpop.xlane.xlu0 %628 }
 0x403   :  { %v630_v11 = vsub.f32 %v626_v60, %v629_v10 }
 0x405   :  { %v631_v15 = vmul.f32 1.442695, %v630_v11 }
 0x409   :  { %v3093_v2 = vpop.eup %3092 }
 0x40a   :  { %v289_v3 = vsel %vm282_vm3, %v3093_v2, 0.0 }
 0x40b   :  { %290 = vadd.xlane.f32.xlu1 %v289_v3 }
 0x41c   :  { %717 = vrot.lane.b32.xlu1 %v3324_v41, %s3175_s27 }
 0x498   :  { %v291_v5 = vpop.xlane.xlu1 %290 }
 0x499   :  { %3094 = vrcp.f32 %v291_v5 }
 0x49a   :  { %3096 = vpow2.f32 %v631_v15 }
 0x49c   :  { %v718_v6 = vpop.permute.xlu1 %717 }
 0x49d   :  { %2845 = vmatpush3.xpose.msk.msra.mxu0 %vm201_vm2, %v718_v6  ;;  %v2639_v6 = vld [vmem:[%s3708_s8] ss:$0 sm:$0xff] }
 0x49e   :  { %3006 = vmatprep.subr.bf16.mxu0 %v3005_v55 }
 0x4a0   :  { %2847 = vmatmul.mubr.msk.f32.vlgmr.msra.gmra.mrb[4].mxu0 %vm201_vm2, %v716_v7 }
 0x4a1   :  { %3008 = vmatpush3.bf16.msra.mxu0 %v3005_v55  ;;  %v1141_v55 = vld [vmem:[%s3713_s13 + $0x20] sm:$0xff] }
 0x4a2   :  { %3010 = vmatprep.subr.bf16.mxu0 %v3009_v59  ;;  %v3029_v58 = vpack.c.bf16 %v1142_v57, %v1141_v55  ;;  %v2650_v55 = vld [vmem:[%s3715_s15] ss:$0 sm:$0xff] }
 0x4a3   :  { %v3095_v8 = vpop.eup %3094 }
 0x4a4   :  { %v293_v9 = vmul.f32 %v3095_v8, %v3093_v2  ;;  %v3097_v25 = vpop.eup %3096 }
 0x4a5   :  { %v633_v26 = vsel %vm282_vm3, %v3097_v25, 0.0  ;;  %3012 = vmatpush3.bf16.msra.mxu0 %v3009_v59  ;;  %v1143_v59 = vld [vmem:[%s3713_s13 + $0x30] sm:$0xff] }
 0x4a6   :  { %2822 = vmatmul.mubr.msk.f32.vlgmr.msra.gmra.mrb[2].mxu1 %vm282_vm3, %v293_v9 }
 0x4a7   :  { %2825 = vmatpush3.xpose.msk.msra.mxu1 %vm201_vm2, %v374_v43  ;;  %2826 = vmatprep.mubr.msk.f32.mxu1 %vm3173_vm1, %v3172_v36 }
 0x4a8   :  { %2829 = vmatprep.subr.mxu1 %v3172_v36 }
 0x4aa   :  { %2827 = vmatmul.mubr.msk.f32.vlgmr.msra.gmra.mrb[4].mxu1 %vm201_vm2, %v372_v4 }
 0x4ab   :  { %2831 = vmatprep.mubr.msk.f32.mxu1 %vm3173_vm1, %v3172_v36 }
 0x573   :  { %v789_v12 = vpop.f32.mrb[4].mxu0 }
 0x574   :  { %v793_v13 = vmul.f32 0.25, %v789_v12  ;;  %v2848_v14 = vpop.f32.mrb[5].mxu0 }
 0x576   :  { %v794_v16 = vadd.f32 %v793_v13, %v3349_v56 }
 0x578   :  { %v795_v17 = vsel %vm282_vm3, %v794_v16, -inf }
 0x579   :  { %v366_v18 = vpop.f32.mrb[2].mxu1  ;;  %796 = vmax.xlane.f32.xlu0 %v795_v17 }
 0x57a   :  { %370 = vst.msk [vmem:[#allocation2] sm:$0xff] %vm201_vm2, %v366_v18  ;;  %v2823_v19 = vpop.f32.mrb[3].mxu1 }
 0x57d   :  { %v445_v20 = vpop.f32.mrb[4].mxu1 }
 0x57e   :  { %v449_v21 = vmul.f32 0.25, %v445_v20  ;;  %v2828_v22 = vpop.f32.mrb[5].mxu1 }
 0x580   :  { %v450_v23 = vadd.f32 %v449_v21, %v3345_v49 }
 0x582   :  { %v451_v24 = vsel %vm282_vm3, %v450_v23, -inf }
 0x583   :  { %452 = vmax.xlane.f32.xlu1 %v451_v24  ;;  %v1028_v24 = vld [vmem:[%s3711_s11 + $0x8] sm:$0xff] }
 0x587   :  { %634 = vadd.xlane.f32.xlu1 %v633_v26  ;;  %v1029_v26 = vld [vmem:[%s3711_s11 + $0x10] sm:$0xff] }
 0x598   :  { %462 = vrot.lane.b32.xlu1 %v3318_v40, %s3178_s19 }
 0x59c   :  { %806 = vrot.lane.b32.xlu1 %v3324_v41, %s3178_s19 }
 0x606   :  { %v797_v27 = vpop.xlane.xlu0 %796 }
 0x607   :  { %v798_v28 = vsub.f32 %v794_v16, %v797_v27  ;;  %v1030_v27 = vld [vmem:[%s3711_s11 + $0x18] sm:$0xff] }
 0x609   :  { %v799_v29 = vmul.f32 1.442695, %v798_v28  ;;  %v3017_v28 = vpack.c.bf16 %v1030_v27, %v1029_v26 }
 0x60b   :  { %3098 = vpow2.f32 %v799_v29 }
 0x610   :  { %v453_v30 = vpop.xlane.xlu1 %452 }
 0x611   :  { %v454_v31 = vsub.f32 %v450_v23, %v453_v30 }
 0x613   :  { %v455_v32 = vmul.f32 1.442695, %v454_v31 }
 0x614   :  { %v635_v34 = vpop.xlane.xlu1 %634 }
 0x615   :  { %v3099_v37 = vpop.eup %3098  ;;  %3100 = vpow2.f32 %v455_v32 }
 0x616   :  { %v801_v38 = vsel %vm282_vm3, %v3099_v37, 0.0 }
 0x617   :  { %802 = vadd.xlane.f32.xlu0 %v801_v38 }
 0x618   :  { %v463_v39 = vpop.permute.xlu1 %462 }
 0x619   :  { %2830 = vmatpush3.msra.mxu1 %v463_v39  ;;  %v2642_v39 = vld [vmem:[%s3709_s9] ss:$0 sm:$0xff] }
 0x61a   :  { %2839 = vmatprep.subr.mxu1 %v3172_v36 }
 0x61f   :  { %v3101_v40 = vpop.eup %3100 }
 0x620   :  { %v457_v42 = vsel %vm282_vm3, %v3101_v40, 0.0 }
 0x621   :  { %458 = vadd.xlane.f32.xlu0 %v457_v42  ;;  %v2643_v42 = vld [vmem:[%s3710_s10] ss:$0 sm:$0xff] }
 0x637   :  { %638 = vrot.lane.b32.xlu0 %v3324_v41, %s3177_s18  ;;  %v807_v41 = vpop.permute.xlu1 %806 }
 0x6a4   :  { %v803_v43 = vpop.xlane.xlu0 %802 }
 0x6ae   :  { %v459_v44 = vpop.xlane.xlu0 %458 }
 0x6af   :  { %3102 = vrcp.f32 %v459_v44 }
 0x6b0   :  { %3104 = vrcp.f32 %v635_v34 }
 0x6b1   :  { %3106 = vrcp.f32 %v803_v43 }
 0x6b2   :  { %v639_v48 = vpop.permute.xlu0 %638 }
 0x6b9   :  { %v3103_v45 = vpop.eup %3102 }
 0x6ba   :  { %v461_v46 = vmul.f32 %v3103_v45, %v3101_v40  ;;  %v3105_v47 = vpop.eup %3104 }
 0x6bb   :  { %v637_v50 = vmul.f32 %v3105_v47, %v3097_v25  ;;  %v3107_v51 = vpop.eup %3106 }
 0x6bc   :  { %2832 = vmatmul.mubr.msk.f32.vlgmr.msra.gmra.mrb[6].mxu1 %vm282_vm3, %v461_v46  ;;  %v805_v52 = vmul.f32 %v3107_v51, %v3099_v37  ;;  %v1138_v51 = vld [vmem:[%s3713_s13 + $0x8] sm:$0xff] }
 0x6bd   :  { %2840 = vmatpush3.msra.mxu1 %v639_v48  ;;  %2841 = vmatprep.mubr.msk.f32.mxu1 %vm3173_vm1, %v3172_v36 }
 0x6be   :  { %2849 = vmatprep.subr.mxu1 %v3172_v36 }
 0x6c0   :  { %2842 = vmatmul.mubr.msk.f32.vlgmr.msra.gmra.mrb[8].mxu1 %vm282_vm3, %v637_v50  ;;  %v1137_v50 = vld [vmem:[%s3713_s13] sm:$0xff] }
 0x6c1   :  { %2850 = vmatpush3.msra.mxu1 %v807_v41  ;;  %2851 = vmatprep.mubr.msk.f32.mxu1 %vm3173_vm1, %v3172_v36  ;;  %v3021_v41 = vpack.c.bf16 %v1138_v51, %v1137_v50 }
 0x6c3   :  { %3022 = vmatprep.subr.bf16.mxu0 %v3021_v41 }
 0x6c4   :  { %2852 = vmatmul.mubr.msk.f32.vlgmr.msra.gmra.mrb[10].mxu1 %vm282_vm3, %v805_v52  ;;  %v1139_v52 = vld [vmem:[%s3713_s13 + $0x10] sm:$0xff] }
 0x6c5   :  { %v3025_v54 = vpack.c.bf16 %v1140_v53, %v1139_v52 }
 0x78f   :  { %v534_v60 = vpop.f32.mrb[6].mxu1 }
 0x790   :  { %539 = vrot.lane.b32.xlu1 %v534_v60, %s3179_s4  ;;  %v2833_v61 = vpop.f32.mrb[7].mxu1  ;;  %v1144_v60 = vld [vmem:[%s3713_s13 + $0x38] sm:$0xff] }
 0x791   :  { %v3033_v61 = vpack.c.bf16 %v1144_v60, %v1143_v59  ;;  %v2651_v60 = vld [vmem:[%s3716_s16] ss:$0 sm:$0xff] }
 0x793   :  { %v710_v62 = vpop.f32.mrb[8].mxu1 }
 0x794   :  { %714 = vst.msk [vmem:[#allocation2 + $0x8] sm:$0xff] %vm201_vm2, %v710_v62  ;;  %v2843_v63 = vpop.f32.mrb[9].mxu1  ;;  %v2644_v62 = vld [vmem:[%s3712_s12] ss:$0 sm:$0xff] }
 0x797   :  { %v878_v0 = vpop.f32.mrb[10].mxu1 }
 0x798   :  { %883 = vrot.lane.b32.xlu1 %v878_v0, %s3179_s4  ;;  %v2853_v1 = vpop.f32.mrb[11].mxu1 }
 0x802   :  { %v540_v2 = vpop.permute.xlu1 %539 }
 0x803   :  { %543 = vst.msk [vmem:[#allocation2] sm:$0xff] %vm542_vm4, %v540_v2 }
 0x80a   :  { %v884_v3 = vpop.permute.xlu1 %883  ;;  %v887_v4 = vld [vmem:[#allocation2] sm:$0xff] }
 0x80b   :  { %886 = vst.msk [vmem:[#allocation2 + $0x8] sm:$0xff] %vm542_vm4, %v884_v3  ;;  %2862 = vmatprep.mubr.msk.f32.mxu0 %vm61_vm0, %v887_v4 }
 0x812   :  { %v888_v5 = vld [vmem:[#allocation2 + $0x8] sm:$0xff] }
 0x813   :  { %2863 = vmatmul.mubr.msk.f32.vlgmr.msra.gmra.mrb[6].mxu0 %vm61_vm0, %v888_v5 }
 0x814   :  { %3024 = vmatpush3.bf16.msra.mxu0 %v3021_v41 }
 0x815   :  { %3026 = vmatprep.subr.bf16.mxu0 %v3025_v54 }
 0x818   :  { %3028 = vmatpush3.bf16.msra.mxu0 %v3025_v54 }
 0x819   :  { %3030 = vmatprep.subr.bf16.mxu0 %v3029_v58 }
 0x81c   :  { %3032 = vmatpush3.bf16.msra.mxu0 %v3029_v58 }
 0x81d   :  { %3034 = vmatprep.subr.bf16.mxu0 %v3033_v61 }
 0x820   :  { %3036 = vmatpush3.bf16.msra.mxu0 %v3033_v61 }
 0x821   :  { %2916 = vmatprep.subr.mxu0 %v3172_v36 }
 0x8e6   :  { %v2864_v7 = vpop.f32.mrb[6].mxu0 }
 0x8e7   :  { %v978_v8 = vadd.f32 %v2864_v7, %v2639_v6  ;;  %v972_v9 = vpop.f32.mrb[7].mxu0 }
 0x8e8   :  { %v973_v10 = vadd.f32 %v2639_v6, %v972_v9 }
 0x8e9   :  { %v982_v11 = vadd.f32 %v978_v8, %v3305_v35 }
 0x8ea   :  { %v981_v12 = vadd.f32 %v973_v10, %v3301_v33  ;;  %v1027_v33 = vld [vmem:[%s3711_s11] sm:$0xff] }
 0x8eb   :  { %v988_v13 = vsel %vm61_vm0, %v982_v11, 0.0  ;;  %v3013_v25 = vpack.c.bf16 %v1028_v24, %v1027_v33 }
 0x8ec   :  { %989 = vadd.xlane.f32.xlu1 %v988_v13  ;;  %v985_v14 = vsel %vm61_vm0, %v981_v12, 0.0 }
 0x8ed   :  { %986 = vadd.xlane.f32.xlu0 %v985_v14  ;;  %3014 = vmatprep.subr.bf16.mxu1 %v3013_v25 }
 0x8ee   :  { %3016 = vmatpush3.bf16.msra.mxu1 %v3013_v25 }
 0x8ef   :  { %3018 = vmatprep.subr.bf16.mxu1 %v3017_v28 }
 0x8f2   :  { %3020 = vmatpush3.bf16.msra.mxu1 %v3017_v28 }
 0x979   :  { %v990_v15 = vpop.xlane.xlu1 %989 }
 0x97a   :  { %v992_v16 = vmul.f32 0.03125, %v990_v15  ;;  %v987_v17 = vpop.xlane.xlu0 %986 }
 0x97b   :  { %v991_v18 = vmul.f32 0.03125, %v987_v17 }
 0x97c   :  { %v994_v19 = vsub.f32 %v982_v11, %v992_v16 }
 0x97d   :  { %v993_v20 = vsub.f32 %v981_v12, %v991_v18 }
 0x97e   :  { %v996_v23 = vmul.f32 %v994_v19, %v994_v19 }
 0x97f   :  { %v995_v21 = vmul.f32 %v993_v20, %v993_v20 }
 0x980   :  { %v1000_v35 = vsel %vm61_vm0, %v996_v23, 0.0 }
 0x981   :  { %v997_v22 = vsel %vm61_vm0, %v995_v21, 0.0  ;;  %v2647_v21 = vld [vmem:[%s3714_s14] ss:$0 sm:$0xff] }
 0x982   :  { %998 = vadd.xlane.f32.xlu0 %v997_v22 }
 0x986   :  { %1001 = vadd.xlane.f32.xlu0 %v1000_v35 }
 0xa0f   :  { %v999_v29 = vpop.xlane.xlu0 %998 }
 0xa10   :  { %v1003_v30 = vmul.f32 0.03125, %v999_v29 }
 0xa12   :  { %v1005_v31 = vadd.f32 1e-12, %v1003_v30 }
 0xa13   :  { %v1002_v32 = vpop.xlane.xlu0 %1001 }
 0xa14   :  { %3108 = vrsqrt.f32 %v1005_v31  ;;  %v1004_v34 = vmul.f32 0.03125, %v1002_v32 }
 0xa16   :  { %v1006_v37 = vadd.f32 1e-12, %v1004_v34 }
 0xa18   :  { %3110 = vrsqrt.f32 %v1006_v37 }
 0xa1e   :  { %v3109_v38 = vpop.eup %3108 }
 0xa1f   :  { %v1009_v40 = vmul.f32 %v3109_v38, %v993_v20 }
 0xa21   :  { %v1017_v43 = vmul.f32 %v2642_v39, %v1009_v40 }
 0xa22   :  { %v3111_v44 = vpop.eup %3110 }
 0xa23   :  { %v1010_v45 = vmul.f32 %v3111_v44, %v994_v19  ;;  %v1025_v46 = vadd.f32 %v2643_v42, %v1017_v43  ;;  %v2653_v43 = vld [vmem:[%s3705_s5 + $0x28] sm:$0xff] }
 0xa25   :  { %v1018_v47 = vmul.f32 %v2642_v39, %v1010_v45  ;;  %2873 = vmatprep.mubr.msk.f32.mxu1 %vm61_vm0, %v1025_v46  ;;  %v2654_v45 = vld [vmem:[%s3705_s5 + $0x30] sm:$0xff] }
 0xa27   :  { %v1026_v48 = vadd.f32 %v2643_v42, %v1018_v47  ;;  %v2652_v42 = vld [vmem:[%s3705_s5 + $0x20] sm:$0xff] }
 0xa28   :  { %v3037_v44 = vpack.c.bf16 %v2653_v43, %v2652_v42 }
 0xa29   :  { %2874 = vmatmul.mubr.msk.f32.vlgmr.msra.gmra.mrb[12].mxu1 %vm61_vm0, %v1026_v48 }
 0xa2a   :  { %3038 = vmatprep.subr.bf16.mxu1 %v3037_v44 }
 0xa2b   :  { %3040 = vmatpush3.bf16.msra.mxu1 %v3037_v44 }
 0xafc   :  { %v2875_v63 = vpop.f32.mrb[12].mxu1 }
 0xafd   :  { %v1116_v0 = vadd.f32 %v2875_v63, %v2644_v62  ;;  %v1110_v1 = vpop.f32.mrb[13].mxu1 }
 0xafe   :  { %v1111_v2 = vadd.f32 %v2644_v62, %v1110_v1  ;;  %v2657_v1 = vld [vmem:[%s3706_s6 + $0x1] ss:$0 sm:$0xff] }
 0xaff   :  { %v1122_v3 = vmul.f32 0.044715, %v1116_v0  ;;  %v1120_v18 = vmul.f32 0.5, %v1116_v0 }
 0xb00   :  { %v1121_v4 = vmul.f32 0.044715, %v1111_v2  ;;  %v1119_v16 = vmul.f32 0.5, %v1111_v2 }
 0xb01   :  { %v1124_v5 = vmul.f32 %v1122_v3, %v1116_v0 }
 0xb02   :  { %v1123_v6 = vmul.f32 %v1121_v4, %v1111_v2 }
 0xb03   :  { %v1126_v7 = vmul.f32 %v1124_v5, %v1116_v0 }
 0xb04   :  { %v1125_v8 = vmul.f32 %v1123_v6, %v1111_v2 }
 0xb05   :  { %v1128_v9 = vadd.f32 %v1126_v7, %v1116_v0 }
 0xb06   :  { %v1127_v10 = vadd.f32 %v1125_v8, %v1111_v2 }
 0xb07   :  { %v1130_v11 = vmul.f32 0.7978846, %v1128_v9 }
 0xb08   :  { %v1129_v12 = vmul.f32 0.7978846, %v1127_v10 }
 0xb09   :  { %3112 = vtanh.f32 %v1130_v11 }
 0xb0a   :  { %3114 = vtanh.f32 %v1129_v12 }
 0xb13   :  { %v3113_v13 = vpop.eup %3112 }
 0xb14   :  { %v3115_v14 = vpop.eup %3114  ;;  %v1134_v15 = vadd.f32 1.0, %v3113_v13 }
 0xb15   :  { %v1133_v17 = vadd.f32 1.0, %v3115_v14 }
 0xb16   :  { %v1136_v20 = vmul.f32 %v1134_v15, %v1120_v18 }
 0xb17   :  { %v1135_v19 = vmul.f32 %v1133_v17, %v1119_v16 }
 0xb19   :  { %2892 = vmatprep.mubr.msk.f32.mxu0 %vm1152_vm5, %v1135_v19 }
 0xb1a   :  { %2893 = vmatmul.mubr.msk.f32.vlgmr.msra.gmra.mrb[8].mxu0 %vm1152_vm5, %v1136_v20 }
 0xb1b   :  { %2918 = vmatprep.mubr.msk.f32.mxu0 %vm3173_vm1, %v3172_v36 }
 0xbed   :  { %v2894_v22 = vpop.f32.mrb[8].mxu0 }
 0xbee   :  { %v1231_v23 = vadd.f32 %v2894_v22, %v2647_v21  ;;  %v1225_v35 = vpop.f32.mrb[9].mxu0 }
 0xbef   :  { %v1226_v33 = vadd.f32 %v2647_v21, %v1225_v35 }
 0xbf0   :  { %v1235_v24 = vadd.f32 %v1231_v23, %v1026_v48 }
 0xbf1   :  { %v1234_v25 = vadd.f32 %v1226_v33, %v1025_v46  ;;  %v2655_v46 = vld [vmem:[%s3705_s5 + $0x38] sm:$0xff] }
 0xbf2   :  { %v1241_v26 = vsel %vm61_vm0, %v1235_v24, 0.0  ;;  %v3041_v47 = vpack.c.bf16 %v2655_v46, %v2654_v45 }
 0xbf3   :  { %1242 = vadd.xlane.f32.xlu1 %v1241_v26  ;;  %v1238_v27 = vsel %vm61_vm0, %v1234_v25, 0.0 }
 0xbf4   :  { %1239 = vadd.xlane.f32.xlu0 %v1238_v27  ;;  %3042 = vmatprep.subr.bf16.mxu1 %v3041_v47 }
 0xbf5   :  { %3044 = vmatpush3.bf16.msra.mxu1 %v3041_v47 }
 0xbf6   :  { %2906 = vmatprep.subr.mxu1 %v3172_v36 }
 0xc80   :  { %v1243_v28 = vpop.xlane.xlu1 %1242 }
 0xc81   :  { %v1245_v29 = vmul.f32 0.03125, %v1243_v28  ;;  %v1240_v30 = vpop.xlane.xlu0 %1239 }
 0xc82   :  { %v1244_v31 = vmul.f32 0.03125, %v1240_v30 }
 0xc83   :  { %v1247_v32 = vsub.f32 %v1235_v24, %v1245_v29 }
 0xc84   :  { %v1246_v34 = vsub.f32 %v1234_v25, %v1244_v31 }
 0xc85   :  { %v1249_v37 = vmul.f32 %v1247_v32, %v1247_v32 }
 0xc86   :  { %v1248_v38 = vmul.f32 %v1246_v34, %v1246_v34 }
 0xc87   :  { %v1253_v39 = vsel %vm61_vm0, %v1249_v37, 0.0 }
 0xc88   :  { %1254 = vadd.xlane.f32.xlu1 %v1253_v39  ;;  %v1250_v40 = vsel %vm61_vm0, %v1248_v38, 0.0 }
 0xc89   :  { %1251 = vadd.xlane.f32.xlu0 %v1250_v40 }
 0xd15   :  { %v1255_v48 = vpop.xlane.xlu1 %1254 }
 0xd16   :  { %v1257_v50 = vmul.f32 0.03125, %v1255_v48  ;;  %v1252_v51 = vpop.xlane.xlu0 %1251 }
 0xd17   :  { %v1256_v41 = vmul.f32 0.03125, %v1252_v51 }
 0xd18   :  { %v1259_v52 = vadd.f32 1e-12, %v1257_v50 }
 0xd19   :  { %v1258_v53 = vadd.f32 1e-12, %v1256_v41 }
 0xd1a   :  { %3116 = vrsqrt.f32 %v1259_v52 }
 0xd1b   :  { %3118 = vrsqrt.f32 %v1258_v53 }
 0xd24   :  { %v3117_v54 = vpop.eup %3116 }
 0xd25   :  { %v3119_v57 = vpop.eup %3118  ;;  %v1263_v58 = vmul.f32 %v3117_v54, %v1247_v32 }
 0xd26   :  { %v1262_v59 = vmul.f32 %v3119_v57, %v1246_v34 }
 0xd27   :  { %v1271_v61 = vmul.f32 %v2650_v55, %v1263_v58 }
 0xd28   :  { %v1270_v62 = vmul.f32 %v2650_v55, %v1262_v59 }
 0xd29   :  { %v3502_v0 = vadd.f32 %v2651_v60, %v1271_v61 }
 0xd2a   :  { %v3500_v63 = vadd.f32 %v2651_v60, %v1270_v62 }
 0xd2c   :  { %2903 = vmatprep.mubr.msk.f32.mxu1 %vm61_vm0, %v3500_v63 }
 0xd2d   :  { %2904 = vmatmul.mubr.msk.f32.vlgmr.msra.gmra.mrb[14].mxu1 %vm61_vm0, %v3502_v0 }
 0xd2e   :  { %2908 = vmatprep.mubr.msk.f32.mxu1 %vm3173_vm1, %v3172_v36 }
 0xe00   :  { %v2905_v2 = vpop.f32.mrb[14].mxu1 }
 0xe01   :  { %v1365_v3 = vpop.f32.mrb[15].mxu1  ;;  %v3519_v5 = vadd.f32 %v2905_v2, %v2657_v1 }
 0xe02   :  { %v3513_v4 = vadd.f32 %v2657_v1, %v1365_v3 }
 0xe04   :  { %1543 = vrot.lane.b32.xlu1 %v3513_v4, %s3175_s27  ;;  %1375 = vrot.lane.b32.xlu0 %v3513_v4, %s3174_s26 }
 0xe08   :  { %1541 = vrot.lane.b32.xlu1 %v3513_v4, %s3176_s28  ;;  %1882 = vrot.lane.b32.xlu0 %v3519_v5, %s3175_s27 }
 0xe0c   :  { %1714 = vrot.lane.b32.xlu1 %v3519_v5, %s3174_s26 }
 0xe10   :  { %1880 = vrot.lane.b32.xlu1 %v3519_v5, %s3176_s28 }
 0xe76   :  { %v1544_v6 = vpop.permute.xlu1 %1543  ;;  %v1376_v7 = vpop.permute.xlu0 %1375 }
 0xe77   :  { %2907 = vmatpush3.xpose.msk.msra.mxu1 %vm201_vm2, %v1376_v7  ;;  %2917 = vmatpush3.xpose.msk.msra.mxu0 %vm201_vm2, %v1544_v6 }
 0xe78   :  { %2926 = vmatprep.subr.mxu0 %v3172_v36  ;;  %2911 = vmatprep.subr.mxu1 %v3172_v36 }
 0xe7a   :  { %v1542_v8 = vpop.permute.xlu1 %1541  ;;  %2909 = vmatmul.mubr.msk.f32.vlgmr.msra.gmra.mrb[16].mxu1 %vm201_vm2, %v3513_v4  ;;  %v1883_v10 = vpop.permute.xlu0 %1882 }
 0xe7b   :  { %2919 = vmatmul.mubr.msk.f32.vlgmr.msra.gmra.mrb[10].mxu0 %vm201_vm2, %v1542_v8  ;;  %2913 = vmatprep.mubr.msk.f32.mxu1 %vm3173_vm1, %v3172_v36 }
 0xe7c   :  { %2928 = vmatprep.mubr.msk.f32.mxu0 %vm3173_vm1, %v3172_v36 }
 0xe7e   :  { %v1715_v9 = vpop.permute.xlu1 %1714 }
 0xe7f   :  { %2927 = vmatpush3.xpose.msk.msra.mxu0 %vm201_vm2, %v1715_v9 }
 0xe80   :  { %2936 = vmatprep.subr.mxu0 %v3172_v36 }
 0xe82   :  { %2929 = vmatmul.mubr.msk.f32.vlgmr.msra.gmra.mrb[12].mxu0 %vm201_vm2, %v3519_v5  ;;  %v1881_v11 = vpop.permute.xlu1 %1880 }
 0xe83   :  { %2937 = vmatpush3.xpose.msk.msra.mxu0 %vm201_vm2, %v1883_v10  ;;  %2938 = vmatprep.mubr.msk.f32.mxu0 %vm3173_vm1, %v3172_v36 }
 0xe86   :  { %2939 = vmatmul.mubr.msk.f32.vlgmr.msra.gmra.mrb[14].mxu0 %vm201_vm2, %v1881_v11 }
 0xf4d   :  { %v1447_v12 = vpop.f32.mrb[16].mxu1 }
 0xf4e   :  { %v1451_v13 = vmul.f32 0.25, %v1447_v12  ;;  %v2910_v14 = vpop.f32.mrb[17].mxu1  ;;  %v1615_v15 = vpop.f32.mrb[10].mxu0 }
 0xf4f   :  { %v1619_v16 = vmul.f32 0.25, %v1615_v15  ;;  %v2920_v17 = vpop.f32.mrb[11].mxu0  ;;  %v2673_v14 = vld [vmem:[%s3707_s7 + $0x28] sm:$0xff] }
 0xf50   :  { %v1452_v18 = vadd.f32 %v1451_v13, %v3345_v49  ;;  %v2672_v13 = vld [vmem:[%s3707_s7 + $0x20] sm:$0xff]  ;;  %v2675_v17 = vld [vmem:[%s3707_s7 + $0x38] sm:$0xff] }
 0xf51   :  { %v1620_v19 = vadd.f32 %v1619_v16, %v3345_v49  ;;  %v3045_v15 = vpack.c.bf16 %v2673_v14, %v2672_v13  ;;  %v2674_v16 = vld [vmem:[%s3707_s7 + $0x30] sm:$0xff]  ;;  %v2699_v13 = vld [vmem:[%s3713_s13 + $0x78] sm:$0xff] }
 0xf52   :  { %v1453_v20 = vsel %vm282_vm3, %v1452_v18, -inf }
 0xf53   :  { %1454 = vmax.xlane.f32.xlu0 %v1453_v20  ;;  %v1621_v21 = vsel %vm282_vm3, %v1620_v19, -inf  ;;  %3046 = vmatprep.subr.bf16.mxu0 %v3045_v15 }
 0xf54   :  { %1622 = vmax.xlane.f32.xlu1 %v1621_v21  ;;  %3048 = vmatpush3.bf16.msra.mxu0 %v3045_v15  ;;  %v2689_v15 = vld [vmem:[%s3712_s12 + $0x1] ss:$0 sm:$0xff] }
 0xf55   :  { %v1786_v22 = vpop.f32.mrb[12].mxu0 }
 0xf56   :  { %v1790_v23 = vmul.f32 0.25, %v1786_v22  ;;  %v2930_v35 = vpop.f32.mrb[13].mxu0 }
 0xf58   :  { %v1791_v33 = vadd.f32 %v1790_v23, %v3349_v56 }
 0xf59   :  { %v1954_v24 = vpop.f32.mrb[14].mxu0 }
 0xf5a   :  { %v1958_v25 = vmul.f32 0.25, %v1954_v24  ;;  %v2940_v26 = vpop.f32.mrb[15].mxu0  ;;  %v1792_v27 = vsel %vm282_vm3, %v1791_v33, -inf }
 0xf5b   :  { %1793 = vmax.xlane.f32.xlu0 %v1792_v27 }
 0xf5c   :  { %v1959_v28 = vadd.f32 %v1958_v25, %v3349_v56 }
 0xf5e   :  { %v1960_v49 = vsel %vm282_vm3, %v1959_v28, -inf }
 0xf5f   :  { %1961 = vmax.xlane.f32.xlu0 %v1960_v49 }
 0xfe0   :  { %v1455_v29 = vpop.xlane.xlu0 %1454 }
 0xfe1   :  { %v1456_v30 = vsub.f32 %v1452_v18, %v1455_v29  ;;  %v1623_v31 = vpop.xlane.xlu1 %1622  ;;  %v3049_v18 = vpack.c.bf16 %v2675_v17, %v2674_v16 }
 0xfe2   :  { %v1624_v32 = vsub.f32 %v1620_v19, %v1623_v31 }
 0xfe3   :  { %v1457_v34 = vmul.f32 1.442695, %v1456_v30  ;;  %3050 = vmatprep.subr.bf16.mxu0 %v3049_v18 }
 0xfe4   :  { %v1625_v37 = vmul.f32 1.442695, %v1624_v32  ;;  %3052 = vmatpush3.bf16.msra.mxu0 %v3049_v18 }
 0xfe5   :  { %3120 = vpow2.f32 %v1457_v34 }
 0xfe6   :  { %3122 = vpow2.f32 %v1625_v37 }
 0xfe8   :  { %v1794_v38 = vpop.xlane.xlu0 %1793 }
 0xfe9   :  { %v1795_v39 = vsub.f32 %v1791_v33, %v1794_v38  ;;  %v2677_v33 = vld [vmem:[%s3708_s8 + $0x1] ss:$0 sm:$0xff] }
 0xfeb   :  { %v1796_v40 = vmul.f32 1.442695, %v1795_v39 }
 0xfec   :  { %v1962_v47 = vpop.xlane.xlu0 %1961 }
 0xfed   :  { %3124 = vpow2.f32 %v1796_v40  ;;  %v1963_v48 = vsub.f32 %v1959_v28, %v1962_v47 }
 0xfef   :  { %v3121_v42 = vpop.eup %3120  ;;  %v1964_v50 = vmul.f32 1.442695, %v1963_v48 }
 0xff0   :  { %v3123_v43 = vpop.eup %3122  ;;  %v1459_v44 = vsel %vm282_vm3, %v3121_v42, 0.0 }
 0xff1   :  { %1460 = vadd.xlane.f32.xlu0 %v1459_v44  ;;  %v1627_v56 = vsel %vm282_vm3, %v3123_v43, 0.0  ;;  %3126 = vpow2.f32 %v1964_v50  ;;  %v2685_v44 = vld [vmem:[%s3711_s11 + $0x28] sm:$0xff] }
 0xff2   :  { %1628 = vadd.xlane.f32.xlu1 %v1627_v56 }
 0xff7   :  { %v3125_v45 = vpop.eup %3124 }
 0xff8   :  { %v1798_v46 = vsel %vm282_vm3, %v3125_v45, 0.0 }
 0xff9   :  { %1799 = vadd.xlane.f32.xlu0 %v1798_v46  ;;  %v2687_v46 = vld [vmem:[%s3711_s11 + $0x38] sm:$0xff] }
 0xffb   :  { %v3127_v51 = vpop.eup %3126 }
 0xffc   :  { %v1966_v41 = vsel %vm282_vm3, %v3127_v51, 0.0 }
0x1003   :  { %1632 = vrot.lane.b32.xlu1 %v3513_v4, %s3178_s19 }
0x1007   :  { %1803 = vrot.lane.b32.xlu1 %v3519_v5, %s3177_s18 }
0x100f   :  { %1464 = vrot.lane.b32.xlu0 %v3513_v4, %s3177_s18 }
0x102b   :  { %1967 = vadd.xlane.f32.xlu1 %v1966_v41 }
0x103c   :  { %1971 = vrot.lane.b32.xlu1 %v3519_v5, %s3178_s19 }
0x107e   :  { %v1461_v52 = vpop.xlane.xlu0 %1460 }
0x107f   :  { %3128 = vrcp.f32 %v1461_v52  ;;  %v1629_v53 = vpop.xlane.xlu1 %1628 }
0x1080   :  { %3130 = vrcp.f32 %v1629_v53 }
0x1083   :  { %v1633_v58 = vpop.permute.xlu1 %1632 }
0x1086   :  { %v1800_v54 = vpop.xlane.xlu0 %1799 }
0x1087   :  { %3132 = vrcp.f32 %v1800_v54  ;;  %v1804_v62 = vpop.permute.xlu1 %1803 }
0x1089   :  { %v3129_v55 = vpop.eup %3128 }
0x108a   :  { %v1463_v57 = vmul.f32 %v3129_v55, %v3121_v42  ;;  %v1465_v59 = vpop.permute.xlu0 %1464  ;;  %v3131_v60 = vpop.eup %3130  ;;  %v2682_v55 = vld [vmem:[%s3709_s9 + $0x1] ss:$0 sm:$0xff] }
0x108b   :  { %2912 = vmatpush3.msra.mxu1 %v1465_v59  ;;  %v1631_v61 = vmul.f32 %v3131_v60, %v3123_v43 }
0x108c   :  { %2914 = vmatmul.mubr.msk.f32.vlgmr.msra.gmra.mrb[18].mxu1 %vm282_vm3, %v1463_v57  ;;  %2921 = vmatprep.subr.mxu1 %v3172_v36 }
0x108d   :  { %2922 = vmatpush3.msra.mxu1 %v1633_v58  ;;  %2923 = vmatprep.mubr.msk.f32.mxu1 %vm3173_vm1, %v3172_v36  ;;  %v2683_v58 = vld [vmem:[%s3710_s10 + $0x1] ss:$0 sm:$0xff] }
0x108e   :  { %2931 = vmatprep.subr.mxu1 %v3172_v36 }
0x1090   :  { %2924 = vmatmul.mubr.msk.f32.vlgmr.msra.gmra.mrb[20].mxu1 %vm282_vm3, %v1631_v61 }
0x1091   :  { %v3133_v1 = vpop.eup %3132  ;;  %2932 = vmatpush3.msra.mxu1 %v1804_v62  ;;  %2933 = vmatprep.mubr.msk.f32.mxu1 %vm3173_vm1, %v3172_v36 }
0x1092   :  { %v1802_v2 = vmul.f32 %v3133_v1, %v3125_v45  ;;  %2941 = vmatprep.subr.mxu1 %v3172_v36  ;;  %v2686_v45 = vld [vmem:[%s3711_s11 + $0x30] sm:$0xff] }
0x1093   :  { %v3057_v47 = vpack.c.bf16 %v2687_v46, %v2686_v45 }
0x1094   :  { %2934 = vmatmul.mubr.msk.f32.vlgmr.msra.gmra.mrb[22].mxu1 %vm282_vm3, %v1802_v2 }
0x1095   :  { %2943 = vmatprep.mubr.msk.f32.mxu1 %vm3173_vm1, %v3172_v36 }
0x10b8   :  { %v1968_v3 = vpop.xlane.xlu1 %1967 }
0x10b9   :  { %3134 = vrcp.f32 %v1968_v3  ;;  %v2692_v3 = vld [vmem:[%s3713_s13 + $0x40] sm:$0xff] }
0x10bc   :  { %v1972_v4 = vpop.permute.xlu1 %1971 }
0x10bd   :  { %2942 = vmatpush3.msra.mxu1 %v1972_v4  ;;  %v2693_v4 = vld [vmem:[%s3713_s13 + $0x48] sm:$0xff] }
0x10c3   :  { %v3135_v5 = vpop.eup %3134 }
0x10c4   :  { %v1970_v6 = vmul.f32 %v3135_v5, %v3127_v51  ;;  %v3061_v5 = vpack.c.bf16 %v2693_v4, %v2692_v3 }
0x10c6   :  { %2944 = vmatmul.mubr.msk.f32.vlgmr.msra.gmra.mrb[24].mxu1 %vm282_vm3, %v1970_v6  ;;  %v2694_v6 = vld [vmem:[%s3713_s13 + $0x50] sm:$0xff]  ;;  %3062 = vmatprep.subr.bf16.mxu0 %v3061_v5 }
0x115f   :  { %v1536_v7 = vpop.f32.mrb[18].mxu1 }
0x1160   :  { %1540 = vst.msk [vmem:[#allocation2] sm:$0xff] %vm201_vm2, %v1536_v7  ;;  %v2915_v8 = vpop.f32.mrb[19].mxu1  ;;  %v2695_v7 = vld [vmem:[%s3713_s13 + $0x58] sm:$0xff] }
0x1161   :  { %v3065_v8 = vpack.c.bf16 %v2695_v7, %v2694_v6 }
0x1163   :  { %v1704_v9 = vpop.f32.mrb[20].mxu1 }
0x1164   :  { %1709 = vrot.lane.b32.xlu0 %v1704_v9, %s3179_s4  ;;  %v2925_v10 = vpop.f32.mrb[21].mxu1  ;;  %v2696_v9 = vld [vmem:[%s3713_s13 + $0x60] sm:$0xff] }
0x1165   :  { %v2697_v10 = vld [vmem:[%s3713_s13 + $0x68] sm:$0xff] }
0x1167   :  { %v1875_v11 = vpop.f32.mrb[22].mxu1 }
0x1168   :  { %1879 = vst.msk [vmem:[#allocation2 + $0x8] sm:$0xff] %vm201_vm2, %v1875_v11  ;;  %v2935_v12 = vpop.f32.mrb[23].mxu1  ;;  %v3069_v11 = vpack.c.bf16 %v2697_v10, %v2696_v9  ;;  %v2454_v9 = vld [vmem:[%s3702_s2] sm:$0xff] }
0x1169   :  { %v2698_v12 = vld [vmem:[%s3713_s13 + $0x70] sm:$0xff] }
0x116a   :  { %v3073_v14 = vpack.c.bf16 %v2699_v13, %v2698_v12 }
0x1199   :  { %v2043_v19 = vpop.f32.mrb[24].mxu1 }
0x119a   :  { %2048 = vrot.lane.b32.xlu1 %v2043_v19, %s3179_s4  ;;  %v2945_v20 = vpop.f32.mrb[25].mxu1 }
0x11d6   :  { %v1710_v21 = vpop.permute.xlu0 %1709 }
0x11d7   :  { %1712 = vst.msk [vmem:[#allocation2] sm:$0xff] %vm542_vm4, %v1710_v21 }
0x11de   :  { %v2052_v22 = vld [vmem:[#allocation2] sm:$0xff] }
0x11df   :  { %2954 = vmatprep.mubr.msk.f32.mxu0 %vm61_vm0, %v2052_v22 }
0x120c   :  { %v2049_v23 = vpop.permute.xlu1 %2048 }
0x120d   :  { %2051 = vst.msk [vmem:[#allocation2 + $0x8] sm:$0xff] %vm542_vm4, %v2049_v23 }
0x1214   :  { %v2053_v35 = vld [vmem:[#allocation2 + $0x8] sm:$0xff] }
0x1215   :  { %2955 = vmatmul.mubr.msk.f32.vlgmr.msra.gmra.mrb[16].mxu0 %vm61_vm0, %v2053_v35 }
0x1216   :  { %3064 = vmatpush3.bf16.msra.mxu0 %v3061_v5  ;;  %v2707_v5 = vld [vmem:[%s3716_s16 + $0x1] ss:$0 sm:$0xff]  ;;  %s3180_s16 = smov [#allocation3]  }
0x1217   :  { %3066 = vmatprep.subr.bf16.mxu0 %v3065_v8  ;;  %s2611_s6 = sshll.u32 %s3180_s16, 4  ;;  %s2612_s6 = int_to_ptr.vmem [resolvable:$true] %s2611_s6 }
0x1218   :  { %s3148_s9 = scalar_lea.vmem %s2612_s6, 256  ;;  %p3153_p1 = scmp.lt.s32.totalorder %s2612_s6, %s2612_s6 }
0x1219   :  { %p3149_p0 = scmp.ne.s32.totalorder %s2612_s6, %s3148_s9  ;;  %p3154_p2 = scmp.lt.s32.totalorder %s3148_s9, %s3148_s9 }
0x121a   :  { %3068 = vmatpush3.bf16.msra.mxu0 %v3065_v8 }
0x121b   :  { %3070 = vmatprep.subr.bf16.mxu0 %v3069_v11  ;;  %p3155_p3 = por %p3154_p2, %p3153_p1 }
0x121d   :  { %p3156_p4 = pnand %p3155_p3, %p3149_p0 }
0x121e   :  { %3072 = vmatpush3.bf16.msra.mxu0 %v3069_v11  ;;  %v2709_v11 = vld [vmem:[%s3702_s2 + $0x8] sm:$0xff] }
0x121f   :  { %3074 = vmatprep.subr.bf16.mxu0 %v3073_v14 }
0x1222   :  { %3076 = vmatpush3.bf16.msra.mxu0 %v3073_v14 }
0x12e8   :  { %v2956_v24 = vpop.f32.mrb[16].mxu0 }
0x12e9   :  { %v2145_v25 = vadd.f32 %v2956_v24, %v2677_v33  ;;  %v2139_v26 = vpop.f32.mrb[17].mxu0 }
0x12ea   :  { %v2140_v27 = vadd.f32 %v2677_v33, %v2139_v26 }
0x12eb   :  { %v2149_v28 = vadd.f32 %v2145_v25, %v3502_v0 }
0x12ec   :  { %v2148_v49 = vadd.f32 %v2140_v27, %v3500_v63  ;;  %v2684_v63 = vld [vmem:[%s3711_s11 + $0x20] sm:$0xff] }
0x12ed   :  { %v2157_v29 = vsel %vm61_vm0, %v2149_v28, 0.0  ;;  %v3053_v56 = vpack.c.bf16 %v2685_v44, %v2684_v63 }
0x12ee   :  { %2158 = vadd.xlane.f32.xlu1 %v2157_v29  ;;  %v2154_v30 = vsel %vm61_vm0, %v2148_v49, 0.0 }
0x12ef   :  { %2155 = vadd.xlane.f32.xlu0 %v2154_v30  ;;  %3054 = vmatprep.subr.bf16.mxu1 %v3053_v56 }
0x12f0   :  { %3056 = vmatpush3.bf16.msra.mxu1 %v3053_v56 }
0x12f1   :  { %3058 = vmatprep.subr.bf16.mxu1 %v3057_v47 }
0x12f4   :  { %3060 = vmatpush3.bf16.msra.mxu1 %v3057_v47 }
0x12f5   :  { %2987 = vmatprep.subr.mxu1 %v3172_v36 }
0x137b   :  { %v2159_v31 = vpop.xlane.xlu1 %2158 }
0x137c   :  { %v2161_v32 = vmul.f32 0.03125, %v2159_v31  ;;  %v2156_v34 = vpop.xlane.xlu0 %2155 }
0x137d   :  { %v2160_v37 = vmul.f32 0.03125, %v2156_v34 }
0x137e   :  { %v2163_v38 = vsub.f32 %v2149_v28, %v2161_v32 }
0x137f   :  { %v2162_v39 = vsub.f32 %v2148_v49, %v2160_v37 }
0x1380   :  { %v2165_v43 = vmul.f32 %v2163_v38, %v2163_v38 }
0x1381   :  { %v2164_v40 = vmul.f32 %v2162_v39, %v2162_v39 }
0x1382   :  { %v2169_v0 = vsel %vm61_vm0, %v2165_v43, 0.0 }
0x1383   :  { %v2166_v42 = vsel %vm61_vm0, %v2164_v40, 0.0 }
0x1384   :  { %2167 = vadd.xlane.f32.xlu0 %v2166_v42 }
0x1388   :  { %2170 = vadd.xlane.f32.xlu0 %v2169_v0 }
0x1411   :  { %v2168_v48 = vpop.xlane.xlu0 %2167 }
0x1412   :  { %v2172_v50 = vmul.f32 0.03125, %v2168_v48 }
0x1414   :  { %v2174_v51 = vadd.f32 1e-12, %v2172_v50 }
0x1415   :  { %v2171_v41 = vpop.xlane.xlu0 %2170 }
0x1416   :  { %3136 = vrsqrt.f32 %v2174_v51  ;;  %v2173_v52 = vmul.f32 0.03125, %v2171_v41 }
0x1418   :  { %v2175_v53 = vadd.f32 1e-12, %v2173_v52 }
0x141a   :  { %3138 = vrsqrt.f32 %v2175_v53 }
0x1420   :  { %v3137_v54 = vpop.eup %3136 }
0x1421   :  { %v2178_v57 = vmul.f32 %v3137_v54, %v2162_v39 }
0x1423   :  { %v2186_v59 = vmul.f32 %v2682_v55, %v2178_v57 }
0x1424   :  { %v3139_v60 = vpop.eup %3138 }
0x1425   :  { %v2179_v61 = vmul.f32 %v3139_v60, %v2163_v38  ;;  %v2194_v62 = vadd.f32 %v2683_v58, %v2186_v59  ;;  %v2701_v38 = vld [vmem:[%s3714_s14 + $0x1] ss:$0 sm:$0xff] }
0x1427   :  { %v2187_v1 = vmul.f32 %v2682_v55, %v2179_v61  ;;  %2965 = vmatprep.mubr.msk.f32.mxu1 %vm61_vm0, %v2194_v62 }
0x1429   :  { %v2195_v2 = vadd.f32 %v2683_v58, %v2187_v1 }
0x142b   :  { %2966 = vmatmul.mubr.msk.f32.vlgmr.msra.gmra.mrb[26].mxu1 %vm61_vm0, %v2195_v2 }
0x142c   :  { %2989 = vmatprep.mubr.msk.f32.mxu1 %vm3173_vm1, %v3172_v36 }
0x14fe   :  { %v2967_v16 = vpop.f32.mrb[26].mxu1 }
0x14ff   :  { %v2287_v17 = vadd.f32 %v2967_v16, %v2689_v15  ;;  %v2281_v18 = vpop.f32.mrb[27].mxu1 }
0x1500   :  { %v2282_v19 = vadd.f32 %v2689_v15, %v2281_v18 }
0x1501   :  { %v2293_v20 = vmul.f32 0.044715, %v2287_v17  ;;  %v2291_v32 = vmul.f32 0.5, %v2287_v17 }
0x1502   :  { %v2292_v21 = vmul.f32 0.044715, %v2282_v19  ;;  %v2290_v30 = vmul.f32 0.5, %v2282_v19 }
0x1503   :  { %v2295_v22 = vmul.f32 %v2293_v20, %v2287_v17 }
0x1504   :  { %v2294_v23 = vmul.f32 %v2292_v21, %v2282_v19 }
0x1505   :  { %v2297_v35 = vmul.f32 %v2295_v22, %v2287_v17 }
0x1506   :  { %v2296_v33 = vmul.f32 %v2294_v23, %v2282_v19 }
0x1507   :  { %v2299_v24 = vadd.f32 %v2297_v35, %v2287_v17 }
0x1508   :  { %v2298_v25 = vadd.f32 %v2296_v33, %v2282_v19 }
0x1509   :  { %v2301_v26 = vmul.f32 0.7978846, %v2299_v24 }
0x150a   :  { %v2300_v27 = vmul.f32 0.7978846, %v2298_v25 }
0x150b   :  { %3140 = vtanh.f32 %v2301_v26 }
0x150c   :  { %3142 = vtanh.f32 %v2300_v27 }
0x1515   :  { %v3141_v28 = vpop.eup %3140 }
0x1516   :  { %v3143_v49 = vpop.eup %3142  ;;  %v2305_v29 = vadd.f32 1.0, %v3141_v28 }
0x1517   :  { %v2304_v31 = vadd.f32 1.0, %v3143_v49 }
0x1518   :  { %v2307_v37 = vmul.f32 %v2305_v29, %v2291_v32 }
0x1519   :  { %v2306_v34 = vmul.f32 %v2304_v31, %v2290_v30 }
0x151b   :  { %2984 = vmatprep.mubr.msk.f32.mxu0 %vm1152_vm5, %v2306_v34 }
0x151c   :  { %2985 = vmatmul.mubr.msk.f32.vlgmr.msra.gmra.mrb[18].mxu0 %vm1152_vm5, %v2307_v37 }
0x15ef   :  { %v2986_v39 = vpop.f32.mrb[18].mxu0 }
0x15f0   :  { %v2403_v40 = vadd.f32 %v2986_v39, %v2701_v38  ;;  %v2397_v42 = vpop.f32.mrb[19].mxu0 }
0x15f1   :  { %v2398_v43 = vadd.f32 %v2701_v38, %v2397_v42 }
0x15f2   :  { %v2407_v0 = vadd.f32 %v2403_v40, %v2195_v2  ;;  %v2706_v2 = vld [vmem:[%s3715_s15 + $0x1] ss:$0 sm:$0xff] }
0x15f3   :  { %v2406_v63 = vadd.f32 %v2398_v43, %v2194_v62 }
0x15f4   :  { %v2415_v44 = vsel %vm61_vm0, %v2407_v0, 0.0 }
0x15f5   :  { %2416 = vadd.xlane.f32.xlu1 %v2415_v44  ;;  %v2412_v56 = vsel %vm61_vm0, %v2406_v63, 0.0 }
0x15f6   :  { %2413 = vadd.xlane.f32.xlu0 %v2412_v56 }
0x1682   :  { %v2417_v45 = vpop.xlane.xlu1 %2416 }
0x1683   :  { %v2419_v46 = vmul.f32 0.03125, %v2417_v45  ;;  %v2414_v47 = vpop.xlane.xlu0 %2413 }
0x1684   :  { %v2418_v48 = vmul.f32 0.03125, %v2414_v47 }
0x1685   :  { %v2421_v50 = vsub.f32 %v2407_v0, %v2419_v46 }
0x1686   :  { %v2420_v51 = vsub.f32 %v2406_v63, %v2418_v48 }
0x1687   :  { %v2423_v41 = vmul.f32 %v2421_v50, %v2421_v50 }
0x1688   :  { %v2422_v52 = vmul.f32 %v2420_v51, %v2420_v51 }
0x1689   :  { %v2427_v53 = vsel %vm61_vm0, %v2423_v41, 0.0 }
0x168a   :  { %2428 = vadd.xlane.f32.xlu1 %v2427_v53  ;;  %v2424_v54 = vsel %vm61_vm0, %v2422_v52, 0.0 }
0x168b   :  { %2425 = vadd.xlane.f32.xlu0 %v2424_v54 }
0x1717   :  { %v2429_v55 = vpop.xlane.xlu1 %2428 }
0x1718   :  { %v2431_v57 = vmul.f32 0.03125, %v2429_v55  ;;  %v2426_v58 = vpop.xlane.xlu0 %2425 }
0x1719   :  { %v2430_v59 = vmul.f32 0.03125, %v2426_v58 }
0x171a   :  { %v2433_v60 = vadd.f32 1e-12, %v2431_v57 }
0x171b   :  { %v2432_v61 = vadd.f32 1e-12, %v2430_v59 }
0x171c   :  { %3144 = vrsqrt.f32 %v2433_v60 }
0x171d   :  { %3146 = vrsqrt.f32 %v2432_v61 }
0x1726   :  { %v3145_v62 = vpop.eup %3144 }
0x1727   :  { %v3147_v1 = vpop.eup %3146  ;;  %v2437_v3 = vmul.f32 %v3145_v62, %v2421_v50 }
0x1728   :  { %v2436_v4 = vmul.f32 %v3147_v1, %v2420_v51 }
0x1729   :  { %v2445_v7 = vmul.f32 %v2706_v2, %v2437_v3 }
0x172a   :  { %v2444_v6 = vmul.f32 %v2706_v2, %v2436_v4 }
0x172b   :  { %v2453_v10 = vadd.f32 %v2707_v5, %v2445_v7 }
0x172c   :  { %v2452_v8 = vadd.f32 %v2707_v5, %v2444_v6 }
0x172e   :  { %2988 = vmatpush3.msra.mxu1 %v2452_v8 }
0x172f   :  { %2992 = vmatprep.subr.mxu1 %v3172_v36  ;;  %2990 = vmatmul.mubr.msk.f32.vlgmr.msra.gmra.mrb[28].mxu1 %vm282_vm3, %v2454_v9 }
0x1730   :  { %2993 = vmatpush3.msra.mxu1 %v2453_v10  ;;  %2994 = vmatprep.mubr.msk.f32.mxu1 %vm3173_vm1, %v3172_v36 }
0x1733   :  { %2995 = vmatmul.mubr.msk.f32.vlgmr.msra.gmra.mrb[30].mxu1 %vm282_vm3, %v2709_v11 }
0x1802   :  { %v2524_v12 = vpop.f32.mrb[28].mxu1 }
0x1803   :  { %2528 = vst.msk [vmem:[#allocation3] sm:$0xff] %vm61_vm0, %v2524_v12  ;;  %v2991_v13 = vpop.f32.mrb[29].mxu1 }
0x1806   :  { %v2600_v14 = vpop.f32.mrb[30].mxu1 }
0x1807   :  { %2605 = vst.msk [vmem:[#allocation3 + $0x8] sm:$0xff] %vm61_vm0, %v2600_v14  ;;  %v2996_v15 = vpop.f32.mrb[31].mxu1 }
0x1808   :  { %3159 = shalt.err (!%p3156_p4)
}
0x1809   :  { %s3160_s27 = scalar_lea.hbm %s3717_s17, 256 }
0x180a   :  { %p3161_p5 = scmp.ne.s32.totalorder %s3717_s17, %s3160_s27  ;;  %p3164_p6 = scmp.lt.u32.totalorder %s3160_s27, %s3717_s17 }
0x180c   :  { %p3166_p7 = pnand %p3164_p6, %p3161_p5 }
0x180e   :  { %3169 = shalt.err (!%p3166_p7)
}
0x180f   :  { %s3181_s1 = smov 128   ;;  %s3182_s20 = smov 8  }
0x1810   :  { %2617 = dma.vmem_to_hbm [thread:$0]  %s2612_s6, 256, %s3717_s17, [#allocation4], %s3181_s1, %s3181_s1, %s3182_s20  }
0x1811   :  { %3170 = dma.done.wait [#allocation4], 256  }
0x1812   :  { %3171 = vsyncadd [#allocation4], 4294967040 }
0x1813   :  { %2621 = vsyncpa [#allocation4], 1 }

</bundles_post_ra>
